<compile_context>
chip_gen: v7x
topology: tpu7x:2x2x1
jax: 0.10.0
libtpu: 0.0.40
codegen_flags: <defaults>
</compile_context>

<pallas_src>
import functools

import jax
import jax.numpy as jnp
import numpy as np
from jax import lax
from jax.experimental import pallas as pl
from jax.experimental.pallas import tpu as pltpu


def conv_out_len(seq_len, ker_size, stride, padding, dilation, stack):
    for _ in range(stack):
        seq_len = int((seq_len + 2 * padding - dilation * (ker_size - 1) - 1)
                      / stride + 1)
    return seq_len


def _decoder_output_paddings(seq_len, num_blocks, ker_size, stride, padding):
    """Mirrors ConvDecoder.__init__'s output_padding computation."""
    if stride > 1:
        op, seq = [], seq_len
        for _ in range(num_blocks):
            op.append(seq % 2)
            seq = conv_out_len(seq, ker_size, stride, padding, 1, 1)
        op = [1 - v for v in op[::-1]] if ker_size % 2 == 1 else op[::-1]
    else:
        op = [0] * num_blocks
    return op


def _downsample_mat(l_full, l_out, stride):
    """(L_full, L_out) 0/1 matrix picking columns 0, s, 2s, ... (per sample)."""
    d = np.zeros((l_full, l_out), np.float32)
    d[np.arange(l_out) * stride, np.arange(l_out)] = 1.0
    return d


def _convt_scatter_mats(l_in, l_out, k_size, stride, padding):
    """S[k]: (L_in, L_out) with S[k][l, stride*l + k - padding] = 1 (per sample)."""
    s = np.zeros((k_size, l_in, l_out), np.float32)
    for k in range(k_size):
        for l in range(l_in):
            t = stride * l + k - padding
            if 0 <= t < l_out:
                s[k, l, t] = 1.0
    return s


def _ae_kernel(x_ref, noise_ref,
               w1_ref, b1_ref, d1_ref,
               w2_ref, b2_ref, d2_ref,
               wp_ref, bp_ref,
               wv_ref, bv_ref, wo_ref, bo_ref,
               gma_ref, bta_ref,
               wu_ref, bu_ref,
               wt1_ref, bt1_ref, s1_ref,
               wt2_ref, bt2_ref, s2_ref,
               wd_ref, bd_ref,
               o_ref):
    """One batch element per grid step; all activations are (channels, length)."""
    f32 = jnp.float32
    K = s1_ref.shape[0]

    # Diffusion noise (single equivalent draw, pre-scaled in the wrapper).
    x = x_ref[...].astype(f32) + noise_ref[...].astype(f32)           # (Cin_p, L0)

    # ---- Conv1 (stride s, VALID) + ReLU ------------------------------------
    # taps stacked on the contraction axis -> one weight matmul, then a tiny
    # (L_full, L_out) downsample matmul implements the stride.
    lf1 = d1_ref.shape[0]
    xcol = jnp.concatenate([x[:, k:k + lf1] for k in range(K)], axis=0)
    h = jnp.dot(w1_ref[...], xcol, preferred_element_type=f32)        # (C1_p, Lf1)
    h = jnp.dot(h, d1_ref[...], preferred_element_type=f32)           # (C1_p, L1)
    h = jnp.maximum(h + b1_ref[...], 0.0)

    # ---- Conv2 + ReLU -------------------------------------------------------
    lf2 = d2_ref.shape[0]
    hcol = jnp.concatenate([h[:, k:k + lf2] for k in range(K)], axis=0)
    h2 = jnp.dot(w2_ref[...], hcol, preferred_element_type=f32)       # (C2, Lf2)
    h2 = jnp.dot(h2, d2_ref[...], preferred_element_type=f32)         # (C2, L2)
    h2 = jnp.maximum(h2 + b2_ref[...], 0.0)

    # ---- Global max-pool over time (single lane reduction) -----------------
    pooled = jnp.max(h2, axis=1, keepdims=True)                       # (C2, 1)

    # ---- 1x1 conv to the embedding dim --------------------------------------
    emb = jnp.dot(wp_ref[...], pooled, preferred_element_type=f32) + bp_ref[...]

    # ---- MultiheadAttention over a length-1 sequence ------------------------
    # softmax over the single key == 1, so attn = out_proj(v_proj(x)) exactly.
    v = jnp.dot(wv_ref[...], emb, preferred_element_type=f32) + bv_ref[...]
    attn = jnp.dot(wo_ref[...], v, preferred_element_type=f32) + bo_ref[...]
    r = attn + emb                                                    # (E, 1)

    # ---- LayerNorm over the embedding dim (rows) ----------------------------
    mu = jnp.mean(r, axis=0, keepdims=True)
    var = jnp.mean((r - mu) ** 2, axis=0, keepdims=True)
    enc = (r - mu) * lax.rsqrt(var + 1e-5) * gma_ref[...] + bta_ref[...]   # (E, 1)

    # ---- Decoder: Linear(1 -> compressed_len) as a broadcast outer product --
    up = enc * wu_ref[...] + bu_ref[...]                              # (E, CL)

    # ---- ConvTranspose1 + ReLU: one stacked weight matmul + K tap scatters --
    ct1 = bt1_ref.shape[0]
    t_all = jnp.dot(wt1_ref[...], up, preferred_element_type=f32)     # (K*Ct1, CL)
    z = None
    for k in range(K):
        tk = t_all[k * ct1:(k + 1) * ct1, :]                          # (Ct1, CL)
        c = jnp.dot(tk, s1_ref[k], preferred_element_type=f32)        # (Ct1, Ld1)
        z = c if z is None else z + c
    z1 = jnp.maximum(z + bt1_ref[...], 0.0)

    # ---- ConvTranspose2 + ReLU ----------------------------------------------
    ct2 = bt2_ref.shape[0]
    t_all2 = jnp.dot(wt2_ref[...], z1, preferred_element_type=f32)    # (K*Ct2, Ld1)
    z = None
    for k in range(K):
        tk = t_all2[k * ct2:(k + 1) * ct2, :]                         # (Ct2, Ld1)
        c = jnp.dot(tk, s2_ref[k], preferred_element_type=f32)        # (Ct2, L0)
        z = c if z is None else z + c
    z2 = jnp.maximum(z + bt2_ref[...], 0.0)

    # ---- Final 1x1 conv back to the input channel count ---------------------
    y = jnp.dot(wd_ref[...], z2, preferred_element_type=f32) + bd_ref[...]   # (Cin, L0)
    o_ref[...] = y.astype(o_ref.dtype)


@functools.partial(jax.jit, static_argnames=("kernel_size", "stride", "padding"))
def atten_diffusion_ae_forward(x, noise, params, *, kernel_size, stride, padding):
    if padding != 0:
        # TODO(synk): padding>0 would require zero-padding the intermediate
        # activation inside the kernel; the module's default config uses 0.
        raise NotImplementedError("only padding=0 is supported")

    B, L0, Cin = x.shape
    Ks, s, p = kernel_size, stride, padding
    f32 = jnp.float32

    W1, b1 = params["W1"], params["b1"]        # (C1, Cin, K), (C1,)
    W2, b2 = params["W2"], params["b2"]        # (C2, C1, K)
    Wp, bp = params["Wp"], params["bp"]        # (E, C2, 1)
    Wqkv, bqkv = params["in_proj_w"], params["in_proj_b"]
    Wo, bo = params["out_proj_w"], params["out_proj_b"]
    ln_g, ln_b = params["ln_g"], params["ln_b"]
    Wu, bu = params["Wu"], params["bu"]        # (CL, 1), (CL,)
    Wt1, bt1 = params["Wt1"], params["bt1"]    # (E, Ct1, K)
    Wt2, bt2 = params["Wt2"], params["bt2"]    # (Ct1, Ct2, K)
    Wd, bd = params["Wd"], params["bd"]        # (Cin, Ct2, 1)

    C1 = W1.shape[0]
    C2 = W2.shape[0]
    E = Wp.shape[0]
    Ct1 = Wt1.shape[1]
    Ct2 = Wt2.shape[1]

    # static sequence-length bookkeeping (mirrors the PyTorch module)
    L1 = conv_out_len(L0, Ks, s, p, 1, 1)
    L2 = conv_out_len(L1, Ks, s, p, 1, 1)
    CL = L2                                    # compressed_len
    op = _decoder_output_paddings(L0, 2, Ks, s, p)
    Ld1 = (CL - 1) * s - 2 * p + Ks + op[0]
    Ld2 = (Ld1 - 1) * s - 2 * p + Ks + op[1]
    assert Ld2 == L0
    Lf1 = L0 - Ks + 1                          # stride-1 conv output lengths
    Lf2 = L1 - Ks + 1

    ceil8 = lambda n: ((n + 7) // 8) * 8
    Cin_p, C1_p = ceil8(Cin), ceil8(C1)

    def pad_axis(a, target, axis):
        extra = target - a.shape[axis]
        if extra == 0:
            return a
        widths = [(0, 0)] * a.ndim
        widths[axis] = (0, extra)
        return jnp.pad(a, widths)

    col = lambda v: v.astype(f32)[:, None]

    # ---- channel-major layout (B, C, L); zero-pad contraction channels ------
    x_cl = pad_axis(jnp.swapaxes(x, 1, 2).astype(f32), Cin_p, 1)      # (B, Cin_p, L0)
    n_cl = pad_axis(jnp.swapaxes(noise, 1, 2).astype(f32), Cin_p, 1)

    # ---- stacked (tap-folded) conv weights -----------------------------------
    W1p = pad_axis(pad_axis(W1.astype(f32), Cin_p, 1), C1_p, 0)       # (C1_p, Cin_p, K)
    W1s = jnp.transpose(W1p, (0, 2, 1)).reshape(C1_p, Ks * Cin_p)
    b1c = col(pad_axis(b1.astype(f32), C1_p, 0))
    W2p = pad_axis(W2.astype(f32), C1_p, 1)                           # (C2, C1_p, K)
    W2s = jnp.transpose(W2p, (0, 2, 1)).reshape(C2, Ks * C1_p)

    Wt1s = jnp.transpose(Wt1.astype(f32), (2, 1, 0)).reshape(Ks * Ct1, E)
    Wt2s = jnp.transpose(Wt2.astype(f32), (2, 1, 0)).reshape(Ks * Ct2, Ct1)

    # ---- small per-sample selection / scatter matrices (linear in B and L) ---
    D1 = jnp.asarray(_downsample_mat(Lf1, L1, s))
    D2 = jnp.asarray(_downsample_mat(Lf2, L2, s))
    S1 = jnp.asarray(_convt_scatter_mats(CL, Ld1, Ks, s, p))
    S2 = jnp.asarray(_convt_scatter_mats(Ld1, Ld2, Ks, s, p))

    Wv = Wqkv[2 * E:].astype(f32)                                     # value proj (E, E)
    bvc = col(bqkv[2 * E:])
    wu_row = Wu[:, 0].astype(f32)[None, :]                            # (1, CL)
    bu_row = bu.astype(f32)[None, :]

    weights = [
        W1s, b1c, D1,
        W2s, col(b2), D2,
        Wp[:, :, 0].astype(f32), col(bp),
        Wv, bvc, Wo.astype(f32), col(bo),
        col(ln_g), col(ln_b),
        wu_row, bu_row,
        Wt1s, col(bt1), S1,
        Wt2s, col(bt2), S2,
        Wd[:, :, 0].astype(f32), col(bd),
    ]

    bspec = lambda a: pl.BlockSpec((None,) + a.shape[1:], lambda b: (b, 0, 0))
    fspec = lambda a: pl.BlockSpec(a.shape, lambda b, _nd=a.ndim: (0,) * _nd)
    in_specs = [bspec(x_cl), bspec(n_cl)] + [fspec(a) for a in weights]

    y_cl = pl.pallas_call(
        _ae_kernel,
        out_shape=jax.ShapeDtypeStruct((B, Cin, L0), x.dtype),
        grid=(B,),
        in_specs=in_specs,
        out_specs=pl.BlockSpec((None, Cin, L0), lambda b: (b, 0, 0)),
        compiler_params=pltpu.CompilerParams(
            dimension_semantics=("parallel",),
            vmem_limit_bytes=32 * 1024 * 1024),
    )(x_cl, n_cl, *weights)

    return jnp.swapaxes(y_cl, 1, 2)                                   # (B, L0, Cin)


def _reference_forward(x, noise, params, *, kernel_size, stride, padding, num_heads):
    """Pure-JAX reference mirroring the PyTorch forward (inference mode)."""
    P = lax.Precision.HIGHEST
    B, L0, Cin = x.shape
    Ks = kernel_size
    E = params["Wp"].shape[0]
    dn = ("NCH", "OIH", "NCH")

    h = jnp.transpose((x + noise).astype(jnp.float32), (0, 2, 1))     # (B, Cin, L0)
    h = lax.conv_general_dilated(h, params["W1"], (stride,), "VALID",
                                 dimension_numbers=dn, precision=P)
    h = jax.nn.relu(h + params["b1"][None, :, None])
    h = lax.conv_general_dilated(h, params["W2"], (stride,), "VALID",
                                 dimension_numbers=dn, precision=P)
    h = jax.nn.relu(h + params["b2"][None, :, None])
    h = jnp.max(h, axis=2, keepdims=True)                             # (B, C2, 1)
    h = jnp.einsum("oc,bcl->bol", params["Wp"][:, :, 0], h, precision=P)
    emb = (h + params["bp"][None, :, None])[:, :, 0]                  # (B, E)

    # MultiheadAttention, sequence length 1 (general formula; softmax == 1).
    Wqkv, bqkv = params["in_proj_w"], params["in_proj_b"]
    q = jnp.dot(emb, Wqkv[:E].T, precision=P) + bqkv[:E]
    k = jnp.dot(emb, Wqkv[E:2 * E].T, precision=P) + bqkv[E:2 * E]
    v = jnp.dot(emb, Wqkv[2 * E:].T, precision=P) + bqkv[2 * E:]
    hd = E // num_heads
    qh = q.reshape(B, num_heads, hd)
    kh = k.reshape(B, num_heads, hd)
    vh = v.reshape(B, num_heads, hd)
    scores = jnp.sum(qh * kh, axis=-1, keepdims=True) / jnp.sqrt(hd)  # (B,H,1)
    w = jax.nn.softmax(scores[..., None], axis=-1)[..., 0]            # all ones
    attn = jnp.dot((w * vh).reshape(B, E), params["out_proj_w"].T,
                   precision=P) + params["out_proj_b"]
    r = attn + emb
    mean = jnp.mean(r, axis=-1, keepdims=True)
    var = jnp.mean((r - mean) ** 2, axis=-1, keepdims=True)
    enc = (r - mean) * lax.rsqrt(var + 1e-5) * params["ln_g"] + params["ln_b"]

    # Decoder.
    ops_ = _decoder_output_paddings(L0, 2, Ks, stride, padding)
    d = enc[:, :, None]                                               # (B, E, 1)
    d = jnp.einsum("bel,cl->bec", d, params["Wu"], precision=P)
    d = d + params["bu"][None, None, :]                               # (B, E, CL)

    def convT(xx, W, bias, opad):
        Wf = jnp.flip(W, axis=2).transpose(1, 0, 2)                   # (out, in, K)
        y = lax.conv_general_dilated(
            xx, Wf, window_strides=(1,),
            padding=[(Ks - 1 - padding, Ks - 1 - padding + opad)],
            lhs_dilation=(stride,), dimension_numbers=dn, precision=P)
        return y + bias[None, :, None]

    d = jax.nn.relu(convT(d, params["Wt1"], params["bt1"], ops_[0]))
    d = jax.nn.relu(convT(d, params["Wt2"], params["bt2"], ops_[1]))
    d = jnp.einsum("oc,bcl->bol", params["Wd"][:, :, 0], d, precision=P)
    d = d + params["bd"][None, :, None]
    return jnp.transpose(d, (0, 2, 1)).astype(x.dtype)                # (B, L0, Cin)


if __name__ == "__main__":
    # Small config consistent with AttenDiffusionAE(input_size, num_filters,
    # embedding_dim, seq_len, kernel_size, ...).
    B, seq_len, input_size = 2, 16, 4
    num_filters = [8, 16]
    embedding_dim = 32
    kernel_size, stride, padding = 3, 2, 0
    timesteps, num_heads = 100, 4

    key = jax.random.PRNGKey(0)
    keys = jax.random.split(key, 24)
    _ki = iter(keys)
    nrm = lambda shape, sc=0.1: sc * jax.random.normal(next(_ki), shape,
                                                       dtype=jnp.float32)

    C1, C2 = num_filters
    E = embedding_dim
    L1 = conv_out_len(seq_len, kernel_size, stride, padding, 1, 1)
    L2 = conv_out_len(L1, kernel_size, stride, padding, 1, 1)
    CL = L2
    Ct1, Ct2 = num_filters[::-1]               # decoder channels: [16, 8]

    params = dict(
        W1=nrm((C1, input_size, kernel_size)), b1=nrm((C1,)),
        W2=nrm((C2, C1, kernel_size)), b2=nrm((C2,)),
        Wp=nrm((E, C2, 1)), bp=nrm((E,)),
        in_proj_w=nrm((3 * E, E)), in_proj_b=nrm((3 * E,)),
        out_proj_w=nrm((E, E)), out_proj_b=nrm((E,)),
        ln_g=1.0 + nrm((E,)), ln_b=nrm((E,)),
        Wu=nrm((CL, 1)), bu=nrm((CL,)),
        Wt1=nrm((E, Ct1, kernel_size)), bt1=nrm((Ct1,)),
        Wt2=nrm((Ct1, Ct2, kernel_size)), bt2=nrm((Ct2,)),
        Wd=nrm((input_size, Ct2, 1)), bd=nrm((input_size,)),
    )

    x = jax.random.normal(next(_ki), (B, seq_len, input_size), dtype=jnp.float32)

    # sum of `timesteps` independent N(0, sigma_t^2) draws == one N(0, sum sigma_t^2)
    sched = np.linspace(0.0001, 0.02, timesteps, dtype=np.float32)
    total_std = float(np.sqrt(np.sum(sched.astype(np.float64) ** 2)))
    noise = total_std * jax.random.normal(next(_ki), x.shape, dtype=jnp.float32)

    out = atten_diffusion_ae_forward(x, noise, params,
                                     kernel_size=kernel_size, stride=stride,
                                     padding=padding)
    out = jax.block_until_ready(out)

    ref = jax.block_until_ready(
        _reference_forward(x, noise, params, kernel_size=kernel_size,
                           stride=stride, padding=padding,
                           num_heads=num_heads))

    assert out.shape == (B, seq_len, input_size) and out.dtype == x.dtype
    np.testing.assert_allclose(np.asarray(out), np.asarray(ref),
                               atol=2e-3, rtol=2e-3)
    print("KERNEL_OK")
</pallas_src>

<mosaic_0001>
module attributes {stable_mosaic.version = 11 : i64} {
  func.func @_ae_kernel(%arg0: i32, %arg1: memref<1x8x16xf32, #tpu.memory_space<vmem>>, %arg2: memref<1x8x16xf32, #tpu.memory_space<vmem>>, %arg3: memref<8x24xf32, #tpu.memory_space<vmem>>, %arg4: memref<8x1xf32, #tpu.memory_space<vmem>>, %arg5: memref<14x7xf32, #tpu.memory_space<vmem>>, %arg6: memref<16x24xf32, #tpu.memory_space<vmem>>, %arg7: memref<16x1xf32, #tpu.memory_space<vmem>>, %arg8: memref<5x3xf32, #tpu.memory_space<vmem>>, %arg9: memref<32x16xf32, #tpu.memory_space<vmem>>, %arg10: memref<32x1xf32, #tpu.memory_space<vmem>>, %arg11: memref<32x32xf32, #tpu.memory_space<vmem>>, %arg12: memref<32x1xf32, #tpu.memory_space<vmem>>, %arg13: memref<32x32xf32, #tpu.memory_space<vmem>>, %arg14: memref<32x1xf32, #tpu.memory_space<vmem>>, %arg15: memref<32x1xf32, #tpu.memory_space<vmem>>, %arg16: memref<32x1xf32, #tpu.memory_space<vmem>>, %arg17: memref<1x3xf32, #tpu.memory_space<vmem>>, %arg18: memref<1x3xf32, #tpu.memory_space<vmem>>, %arg19: memref<48x32xf32, #tpu.memory_space<vmem>>, %arg20: memref<16x1xf32, #tpu.memory_space<vmem>>, %arg21: memref<3x3x7xf32, #tpu.memory_space<vmem>>, %arg22: memref<24x16xf32, #tpu.memory_space<vmem>>, %arg23: memref<8x1xf32, #tpu.memory_space<vmem>>, %arg24: memref<3x7x16xf32, #tpu.memory_space<vmem>>, %arg25: memref<4x8xf32, #tpu.memory_space<vmem>>, %arg26: memref<4x1xf32, #tpu.memory_space<vmem>>, %arg27: memref<1x4x16xf32, #tpu.memory_space<vmem>>) attributes {dimension_semantics = [#tpu.dimension_semantics<parallel>], iteration_bounds = array<i64: 2>, scalar_prefetch = 0 : i64, scratch_operands = 0 : i64, tpu.core_type = #tpu.core_type<tc>, window_params = [{transform_indices = @transform_0, window_bounds = array<i64: 1, 8, 16>}, {transform_indices = @transform_1, window_bounds = array<i64: 1, 8, 16>}, {pipeline_mode = #tpu.pipeline_mode<synchronous>, transform_indices = @transform_2, window_bounds = array<i64: 8, 24>}, {pipeline_mode = #tpu.pipeline_mode<synchronous>, transform_indices = @transform_3, window_bounds = array<i64: 8, 1>}, {pipeline_mode = #tpu.pipeline_mode<synchronous>, transform_indices = @transform_4, window_bounds = array<i64: 14, 7>}, {pipeline_mode = #tpu.pipeline_mode<synchronous>, transform_indices = @transform_5, window_bounds = array<i64: 16, 24>}, {pipeline_mode = #tpu.pipeline_mode<synchronous>, transform_indices = @transform_6, window_bounds = array<i64: 16, 1>}, {pipeline_mode = #tpu.pipeline_mode<synchronous>, transform_indices = @transform_7, window_bounds = array<i64: 5, 3>}, {pipeline_mode = #tpu.pipeline_mode<synchronous>, transform_indices = @transform_8, window_bounds = array<i64: 32, 16>}, {pipeline_mode = #tpu.pipeline_mode<synchronous>, transform_indices = @transform_9, window_bounds = array<i64: 32, 1>}, {pipeline_mode = #tpu.pipeline_mode<synchronous>, transform_indices = @transform_10, window_bounds = array<i64: 32, 32>}, {pipeline_mode = #tpu.pipeline_mode<synchronous>, transform_indices = @transform_11, window_bounds = array<i64: 32, 1>}, {pipeline_mode = #tpu.pipeline_mode<synchronous>, transform_indices = @transform_12, window_bounds = array<i64: 32, 32>}, {pipeline_mode = #tpu.pipeline_mode<synchronous>, transform_indices = @transform_13, window_bounds = array<i64: 32, 1>}, {pipeline_mode = #tpu.pipeline_mode<synchronous>, transform_indices = @transform_14, window_bounds = array<i64: 32, 1>}, {pipeline_mode = #tpu.pipeline_mode<synchronous>, transform_indices = @transform_15, window_bounds = array<i64: 32, 1>}, {pipeline_mode = #tpu.pipeline_mode<synchronous>, transform_indices = @transform_16, window_bounds = array<i64: 1, 3>}, {pipeline_mode = #tpu.pipeline_mode<synchronous>, transform_indices = @transform_17, window_bounds = array<i64: 1, 3>}, {pipeline_mode = #tpu.pipeline_mode<synchronous>, transform_indices = @transform_18, window_bounds = array<i64: 48, 32>}, {pipeline_mode = #tpu.pipeline_mode<synchronous>, transform_indices = @transform_19, window_bounds = array<i64: 16, 1>}, {pipeline_mode = #tpu.pipeline_mode<synchronous>, transform_indices = @transform_20, window_bounds = array<i64: 3, 3, 7>}, {pipeline_mode = #tpu.pipeline_mode<synchronous>, transform_indices = @transform_21, window_bounds = array<i64: 24, 16>}, {pipeline_mode = #tpu.pipeline_mode<synchronous>, transform_indices = @transform_22, window_bounds = array<i64: 8, 1>}, {pipeline_mode = #tpu.pipeline_mode<synchronous>, transform_indices = @transform_23, window_bounds = array<i64: 3, 7, 16>}, {pipeline_mode = #tpu.pipeline_mode<synchronous>, transform_indices = @transform_24, window_bounds = array<i64: 4, 8>}, {pipeline_mode = #tpu.pipeline_mode<synchronous>, transform_indices = @transform_25, window_bounds = array<i64: 4, 1>}, {transform_indices = @transform_26, window_bounds = array<i64: 1, 4, 16>}]} {
    %c0 = arith.constant 0 : index
    %c0_0 = arith.constant 0 : index
    %c0_1 = arith.constant 0 : index
    %0 = vector.load %arg1[%c0, %c0_0, %c0_1] : memref<1x8x16xf32, #tpu.memory_space<vmem>>, vector<1x8x16xf32>
    %1 = vector.shape_cast %0 : vector<1x8x16xf32> to vector<8x16xf32>
    %c0_2 = arith.constant 0 : index
    %c0_3 = arith.constant 0 : index
    %c0_4 = arith.constant 0 : index
    %2 = vector.load %arg2[%c0_2, %c0_3, %c0_4] : memref<1x8x16xf32, #tpu.memory_space<vmem>>, vector<1x8x16xf32>
    %3 = vector.shape_cast %2 : vector<1x8x16xf32> to vector<8x16xf32>
    %4 = arith.addf %1, %3 : vector<8x16xf32>
    %5 = vector.extract_strided_slice %4 {offsets = [0, 0], sizes = [8, 14], strides = [1, 1]} : vector<8x16xf32> to vector<8x14xf32>
    %6 = vector.extract_strided_slice %4 {offsets = [0, 1], sizes = [8, 14], strides = [1, 1]} : vector<8x16xf32> to vector<8x14xf32>
    %7 = vector.extract_strided_slice %4 {offsets = [0, 2], sizes = [8, 14], strides = [1, 1]} : vector<8x16xf32> to vector<8x14xf32>
    %8 = tpu.concatenate %5, %6, %7 in 0 : vector<8x14xf32>, vector<8x14xf32>, vector<8x14xf32> -> vector<24x14xf32>
    %c0_5 = arith.constant 0 : index
    %c0_6 = arith.constant 0 : index
    %9 = vector.load %arg3[%c0_5, %c0_6] : memref<8x24xf32, #tpu.memory_space<vmem>>, vector<8x24xf32>
    %cst = arith.constant dense<0.000000e+00> : vector<8x14xf32>
    %10 = tpu.matmul %9, %8, %cst {dimension_numbers = #tpu.dot_dimension_numbers<[1], [0], [0], [1], [0, 0, 1, 1], [], []>} : vector<8x24xf32>, vector<24x14xf32>, vector<8x14xf32> -> vector<8x14xf32>
    %c0_7 = arith.constant 0 : index
    %c0_8 = arith.constant 0 : index
    %11 = vector.load %arg5[%c0_7, %c0_8] : memref<14x7xf32, #tpu.memory_space<vmem>>, vector<14x7xf32>
    %cst_9 = arith.constant dense<0.000000e+00> : vector<8x7xf32>
    %12 = tpu.matmul %10, %11, %cst_9 {dimension_numbers = #tpu.dot_dimension_numbers<[1], [0], [0], [1], [0, 0, 1, 1], [], []>} : vector<8x14xf32>, vector<14x7xf32>, vector<8x7xf32> -> vector<8x7xf32>
    %c0_10 = arith.constant 0 : index
    %c0_11 = arith.constant 0 : index
    %13 = vector.load %arg4[%c0_10, %c0_11] : memref<8x1xf32, #tpu.memory_space<vmem>>, vector<8x1xf32>
    %14 = vector.broadcast %13 : vector<8x1xf32> to vector<8x7xf32>
    %15 = arith.addf %12, %14 : vector<8x7xf32>
    %cst_12 = arith.constant 0.000000e+00 : f32
    %16 = vector.broadcast %cst_12 : f32 to vector<8x7xf32>
    %17 = arith.maximumf %15, %16 : vector<8x7xf32>
    %18 = vector.extract_strided_slice %17 {offsets = [0, 0], sizes = [8, 5], strides = [1, 1]} : vector<8x7xf32> to vector<8x5xf32>
    %19 = vector.extract_strided_slice %17 {offsets = [0, 1], sizes = [8, 5], strides = [1, 1]} : vector<8x7xf32> to vector<8x5xf32>
    %20 = vector.extract_strided_slice %17 {offsets = [0, 2], sizes = [8, 5], strides = [1, 1]} : vector<8x7xf32> to vector<8x5xf32>
    %21 = tpu.concatenate %18, %19, %20 in 0 : vector<8x5xf32>, vector<8x5xf32>, vector<8x5xf32> -> vector<24x5xf32>
    %c0_13 = arith.constant 0 : index
    %c0_14 = arith.constant 0 : index
    %22 = vector.load %arg6[%c0_13, %c0_14] : memref<16x24xf32, #tpu.memory_space<vmem>>, vector<16x24xf32>
    %cst_15 = arith.constant dense<0.000000e+00> : vector<16x5xf32>
    %23 = tpu.matmul %22, %21, %cst_15 {dimension_numbers = #tpu.dot_dimension_numbers<[1], [0], [0], [1], [0, 0, 1, 1], [], []>} : vector<16x24xf32>, vector<24x5xf32>, vector<16x5xf32> -> vector<16x5xf32>
    %c0_16 = arith.constant 0 : index
    %c0_17 = arith.constant 0 : index
    %24 = vector.load %arg8[%c0_16, %c0_17] : memref<5x3xf32, #tpu.memory_space<vmem>>, vector<5x3xf32>
    %cst_18 = arith.constant dense<0.000000e+00> : vector<16x3xf32>
    %25 = tpu.matmul %23, %24, %cst_18 {dimension_numbers = #tpu.dot_dimension_numbers<[1], [0], [0], [1], [0, 0, 1, 1], [], []>} : vector<16x5xf32>, vector<5x3xf32>, vector<16x3xf32> -> vector<16x3xf32>
    %c0_19 = arith.constant 0 : index
    %c0_20 = arith.constant 0 : index
    %26 = vector.load %arg7[%c0_19, %c0_20] : memref<16x1xf32, #tpu.memory_space<vmem>>, vector<16x1xf32>
    %27 = vector.broadcast %26 : vector<16x1xf32> to vector<16x3xf32>
    %28 = arith.addf %25, %27 : vector<16x3xf32>
    %cst_21 = arith.constant 0.000000e+00 : f32
    %29 = vector.broadcast %cst_21 : f32 to vector<16x3xf32>
    %30 = arith.maximumf %28, %29 : vector<16x3xf32>
    %cst_22 = arith.constant dense<0xFF800000> : vector<16xf32>
    %31 = vector.multi_reduction <maximumf>, %30, %cst_22 [1] : vector<16x3xf32> to vector<16xf32>
    %32 = vector.shape_cast %31 : vector<16xf32> to vector<16x1xf32>
    %c0_23 = arith.constant 0 : index
    %c0_24 = arith.constant 0 : index
    %33 = vector.load %arg9[%c0_23, %c0_24] : memref<32x16xf32, #tpu.memory_space<vmem>>, vector<32x16xf32>
    %cst_25 = arith.constant dense<0.000000e+00> : vector<32x1xf32>
    %34 = tpu.matmul %33, %32, %cst_25 {dimension_numbers = #tpu.dot_dimension_numbers<[1], [0], [0], [1], [0, 0, 1, 1], [], []>} : vector<32x16xf32>, vector<16x1xf32>, vector<32x1xf32> -> vector<32x1xf32>
    %c0_26 = arith.constant 0 : index
    %c0_27 = arith.constant 0 : index
    %35 = vector.load %arg10[%c0_26, %c0_27] : memref<32x1xf32, #tpu.memory_space<vmem>>, vector<32x1xf32>
    %36 = arith.addf %34, %35 : vector<32x1xf32>
    %c0_28 = arith.constant 0 : index
    %c0_29 = arith.constant 0 : index
    %37 = vector.load %arg11[%c0_28, %c0_29] : memref<32x32xf32, #tpu.memory_space<vmem>>, vector<32x32xf32>
    %cst_30 = arith.constant dense<0.000000e+00> : vector<32x1xf32>
    %38 = tpu.matmul %37, %36, %cst_30 {dimension_numbers = #tpu.dot_dimension_numbers<[1], [0], [0], [1], [0, 0, 1, 1], [], []>} : vector<32x32xf32>, vector<32x1xf32>, vector<32x1xf32> -> vector<32x1xf32>
    %c0_31 = arith.constant 0 : index
    %c0_32 = arith.constant 0 : index
    %39 = vector.load %arg12[%c0_31, %c0_32] : memref<32x1xf32, #tpu.memory_space<vmem>>, vector<32x1xf32>
    %40 = arith.addf %38, %39 : vector<32x1xf32>
    %c0_33 = arith.constant 0 : index
    %c0_34 = arith.constant 0 : index
    %41 = vector.load %arg13[%c0_33, %c0_34] : memref<32x32xf32, #tpu.memory_space<vmem>>, vector<32x32xf32>
    %cst_35 = arith.constant dense<0.000000e+00> : vector<32x1xf32>
    %42 = tpu.matmul %41, %40, %cst_35 {dimension_numbers = #tpu.dot_dimension_numbers<[1], [0], [0], [1], [0, 0, 1, 1], [], []>} : vector<32x32xf32>, vector<32x1xf32>, vector<32x1xf32> -> vector<32x1xf32>
    %c0_36 = arith.constant 0 : index
    %c0_37 = arith.constant 0 : index
    %43 = vector.load %arg14[%c0_36, %c0_37] : memref<32x1xf32, #tpu.memory_space<vmem>>, vector<32x1xf32>
    %44 = arith.addf %42, %43 : vector<32x1xf32>
    %45 = arith.addf %44, %36 : vector<32x1xf32>
    %cst_38 = arith.constant dense<0.000000e+00> : vector<1xf32>
    %46 = vector.multi_reduction <add>, %45, %cst_38 [0] : vector<32x1xf32> to vector<1xf32>
    %47 = vector.shape_cast %46 : vector<1xf32> to vector<1x1xf32>
    %cst_39 = arith.constant 3.200000e+01 : f32
    %48 = vector.broadcast %cst_39 : f32 to vector<1x1xf32>
    %49 = arith.divf %47, %48 : vector<1x1xf32>
    %50 = vector.broadcast %49 : vector<1x1xf32> to vector<32x1xf32>
    %51 = arith.subf %45, %50 : vector<32x1xf32>
    %52 = arith.mulf %51, %51 : vector<32x1xf32>
    %cst_40 = arith.constant dense<0.000000e+00> : vector<1xf32>
    %53 = vector.multi_reduction <add>, %52, %cst_40 [0] : vector<32x1xf32> to vector<1xf32>
    %54 = vector.shape_cast %53 : vector<1xf32> to vector<1x1xf32>
    %cst_41 = arith.constant 3.200000e+01 : f32
    %55 = vector.broadcast %cst_41 : f32 to vector<1x1xf32>
    %56 = arith.divf %54, %55 : vector<1x1xf32>
    %57 = vector.broadcast %49 : vector<1x1xf32> to vector<32x1xf32>
    %58 = arith.subf %45, %57 : vector<32x1xf32>
    %cst_42 = arith.constant 9.99999974E-6 : f32
    %59 = vector.broadcast %cst_42 : f32 to vector<1x1xf32>
    %60 = arith.addf %56, %59 : vector<1x1xf32>
    %61 = math.rsqrt %60 : vector<1x1xf32>
    %62 = vector.broadcast %61 : vector<1x1xf32> to vector<32x1xf32>
    %63 = arith.mulf %58, %62 : vector<32x1xf32>
    %c0_43 = arith.constant 0 : index
    %c0_44 = arith.constant 0 : index
    %64 = vector.load %arg15[%c0_43, %c0_44] : memref<32x1xf32, #tpu.memory_space<vmem>>, vector<32x1xf32>
    %65 = arith.mulf %63, %64 : vector<32x1xf32>
    %c0_45 = arith.constant 0 : index
    %c0_46 = arith.constant 0 : index
    %66 = vector.load %arg16[%c0_45, %c0_46] : memref<32x1xf32, #tpu.memory_space<vmem>>, vector<32x1xf32>
    %67 = arith.addf %65, %66 : vector<32x1xf32>
    %c0_47 = arith.constant 0 : index
    %c0_48 = arith.constant 0 : index
    %68 = vector.load %arg17[%c0_47, %c0_48] : memref<1x3xf32, #tpu.memory_space<vmem>>, vector<1x3xf32>
    %69 = vector.broadcast %67 : vector<32x1xf32> to vector<32x3xf32>
    %70 = vector.broadcast %68 : vector<1x3xf32> to vector<32x3xf32>
    %71 = arith.mulf %69, %70 : vector<32x3xf32>
    %c0_49 = arith.constant 0 : index
    %c0_50 = arith.constant 0 : index
    %72 = vector.load %arg18[%c0_49, %c0_50] : memref<1x3xf32, #tpu.memory_space<vmem>>, vector<1x3xf32>
    %73 = vector.broadcast %72 : vector<1x3xf32> to vector<32x3xf32>
    %74 = arith.addf %71, %73 : vector<32x3xf32>
    %c0_51 = arith.constant 0 : index
    %c0_52 = arith.constant 0 : index
    %75 = vector.load %arg19[%c0_51, %c0_52] : memref<48x32xf32, #tpu.memory_space<vmem>>, vector<48x32xf32>
    %cst_53 = arith.constant dense<0.000000e+00> : vector<48x3xf32>
    %76 = tpu.matmul %75, %74, %cst_53 {dimension_numbers = #tpu.dot_dimension_numbers<[1], [0], [0], [1], [0, 0, 1, 1], [], []>} : vector<48x32xf32>, vector<32x3xf32>, vector<48x3xf32> -> vector<48x3xf32>
    %77 = vector.extract_strided_slice %76 {offsets = [0, 0], sizes = [16, 3], strides = [1, 1]} : vector<48x3xf32> to vector<16x3xf32>
    %c0_54 = arith.constant 0 : index
    %c0_55 = arith.constant 0 : index
    %c0_56 = arith.constant 0 : index
    %78 = vector.load %arg21[%c0_54, %c0_55, %c0_56] : memref<3x3x7xf32, #tpu.memory_space<vmem>>, vector<1x3x7xf32>
    %79 = vector.shape_cast %78 : vector<1x3x7xf32> to vector<3x7xf32>
    %cst_57 = arith.constant dense<0.000000e+00> : vector<16x7xf32>
    %80 = tpu.matmul %77, %79, %cst_57 {dimension_numbers = #tpu.dot_dimension_numbers<[1], [0], [0], [1], [0, 0, 1, 1], [], []>} : vector<16x3xf32>, vector<3x7xf32>, vector<16x7xf32> -> vector<16x7xf32>
    %81 = vector.extract_strided_slice %76 {offsets = [16, 0], sizes = [16, 3], strides = [1, 1]} : vector<48x3xf32> to vector<16x3xf32>
    %c1 = arith.constant 1 : index
    %c0_58 = arith.constant 0 : index
    %c0_59 = arith.constant 0 : index
    %82 = vector.load %arg21[%c1, %c0_58, %c0_59] : memref<3x3x7xf32, #tpu.memory_space<vmem>>, vector<1x3x7xf32>
    %83 = vector.shape_cast %82 : vector<1x3x7xf32> to vector<3x7xf32>
    %cst_60 = arith.constant dense<0.000000e+00> : vector<16x7xf32>
    %84 = tpu.matmul %81, %83, %cst_60 {dimension_numbers = #tpu.dot_dimension_numbers<[1], [0], [0], [1], [0, 0, 1, 1], [], []>} : vector<16x3xf32>, vector<3x7xf32>, vector<16x7xf32> -> vector<16x7xf32>
    %85 = arith.addf %80, %84 : vector<16x7xf32>
    %86 = vector.extract_strided_slice %76 {offsets = [32, 0], sizes = [16, 3], strides = [1, 1]} : vector<48x3xf32> to vector<16x3xf32>
    %c2 = arith.constant 2 : index
    %c0_61 = arith.constant 0 : index
    %c0_62 = arith.constant 0 : index
    %87 = vector.load %arg21[%c2, %c0_61, %c0_62] : memref<3x3x7xf32, #tpu.memory_space<vmem>>, vector<1x3x7xf32>
    %88 = vector.shape_cast %87 : vector<1x3x7xf32> to vector<3x7xf32>
    %cst_63 = arith.constant dense<0.000000e+00> : vector<16x7xf32>
    %89 = tpu.matmul %86, %88, %cst_63 {dimension_numbers = #tpu.dot_dimension_numbers<[1], [0], [0], [1], [0, 0, 1, 1], [], []>} : vector<16x3xf32>, vector<3x7xf32>, vector<16x7xf32> -> vector<16x7xf32>
    %90 = arith.addf %85, %89 : vector<16x7xf32>
    %c0_64 = arith.constant 0 : index
    %c0_65 = arith.constant 0 : index
    %91 = vector.load %arg20[%c0_64, %c0_65] : memref<16x1xf32, #tpu.memory_space<vmem>>, vector<16x1xf32>
    %92 = vector.broadcast %91 : vector<16x1xf32> to vector<16x7xf32>
    %93 = arith.addf %90, %92 : vector<16x7xf32>
    %cst_66 = arith.constant 0.000000e+00 : f32
    %94 = vector.broadcast %cst_66 : f32 to vector<16x7xf32>
    %95 = arith.maximumf %93, %94 : vector<16x7xf32>
    %c0_67 = arith.constant 0 : index
    %c0_68 = arith.constant 0 : index
    %96 = vector.load %arg22[%c0_67, %c0_68] : memref<24x16xf32, #tpu.memory_space<vmem>>, vector<24x16xf32>
    %cst_69 = arith.constant dense<0.000000e+00> : vector<24x7xf32>
    %97 = tpu.matmul %96, %95, %cst_69 {dimension_numbers = #tpu.dot_dimension_numbers<[1], [0], [0], [1], [0, 0, 1, 1], [], []>} : vector<24x16xf32>, vector<16x7xf32>, vector<24x7xf32> -> vector<24x7xf32>
    %98 = vector.extract_strided_slice %97 {offsets = [0, 0], sizes = [8, 7], strides = [1, 1]} : vector<24x7xf32> to vector<8x7xf32>
    %c0_70 = arith.constant 0 : index
    %c0_71 = arith.constant 0 : index
    %c0_72 = arith.constant 0 : index
    %99 = vector.load %arg24[%c0_70, %c0_71, %c0_72] : memref<3x7x16xf32, #tpu.memory_space<vmem>>, vector<1x7x16xf32>
    %100 = vector.shape_cast %99 : vector<1x7x16xf32> to vector<7x16xf32>
    %cst_73 = arith.constant dense<0.000000e+00> : vector<8x16xf32>
    %101 = tpu.matmul %98, %100, %cst_73 {dimension_numbers = #tpu.dot_dimension_numbers<[1], [0], [0], [1], [0, 0, 1, 1], [], []>} : vector<8x7xf32>, vector<7x16xf32>, vector<8x16xf32> -> vector<8x16xf32>
    %102 = vector.extract_strided_slice %97 {offsets = [8, 0], sizes = [8, 7], strides = [1, 1]} : vector<24x7xf32> to vector<8x7xf32>
    %c1_74 = arith.constant 1 : index
    %c0_75 = arith.constant 0 : index
    %c0_76 = arith.constant 0 : index
    %103 = vector.load %arg24[%c1_74, %c0_75, %c0_76] : memref<3x7x16xf32, #tpu.memory_space<vmem>>, vector<1x7x16xf32>
    %104 = vector.shape_cast %103 : vector<1x7x16xf32> to vector<7x16xf32>
    %cst_77 = arith.constant dense<0.000000e+00> : vector<8x16xf32>
    %105 = tpu.matmul %102, %104, %cst_77 {dimension_numbers = #tpu.dot_dimension_numbers<[1], [0], [0], [1], [0, 0, 1, 1], [], []>} : vector<8x7xf32>, vector<7x16xf32>, vector<8x16xf32> -> vector<8x16xf32>
    %106 = arith.addf %101, %105 : vector<8x16xf32>
    %107 = vector.extract_strided_slice %97 {offsets = [16, 0], sizes = [8, 7], strides = [1, 1]} : vector<24x7xf32> to vector<8x7xf32>
    %c2_78 = arith.constant 2 : index
    %c0_79 = arith.constant 0 : index
    %c0_80 = arith.constant 0 : index
    %108 = vector.load %arg24[%c2_78, %c0_79, %c0_80] : memref<3x7x16xf32, #tpu.memory_space<vmem>>, vector<1x7x16xf32>
    %109 = vector.shape_cast %108 : vector<1x7x16xf32> to vector<7x16xf32>
    %cst_81 = arith.constant dense<0.000000e+00> : vector<8x16xf32>
    %110 = tpu.matmul %107, %109, %cst_81 {dimension_numbers = #tpu.dot_dimension_numbers<[1], [0], [0], [1], [0, 0, 1, 1], [], []>} : vector<8x7xf32>, vector<7x16xf32>, vector<8x16xf32> -> vector<8x16xf32>
    %111 = arith.addf %106, %110 : vector<8x16xf32>
    %c0_82 = arith.constant 0 : index
    %c0_83 = arith.constant 0 : index
    %112 = vector.load %arg23[%c0_82, %c0_83] : memref<8x1xf32, #tpu.memory_space<vmem>>, vector<8x1xf32>
    %113 = vector.broadcast %112 : vector<8x1xf32> to vector<8x16xf32>
    %114 = arith.addf %111, %113 : vector<8x16xf32>
    %cst_84 = arith.constant 0.000000e+00 : f32
    %115 = vector.broadcast %cst_84 : f32 to vector<8x16xf32>
    %116 = arith.maximumf %114, %115 : vector<8x16xf32>
    %c0_85 = arith.constant 0 : index
    %c0_86 = arith.constant 0 : index
    %117 = vector.load %arg25[%c0_85, %c0_86] : memref<4x8xf32, #tpu.memory_space<vmem>>, vector<4x8xf32>
    %cst_87 = arith.constant dense<0.000000e+00> : vector<4x16xf32>
    %118 = tpu.matmul %117, %116, %cst_87 {dimension_numbers = #tpu.dot_dimension_numbers<[1], [0], [0], [1], [0, 0, 1, 1], [], []>} : vector<4x8xf32>, vector<8x16xf32>, vector<4x16xf32> -> vector<4x16xf32>
    %c0_88 = arith.constant 0 : index
    %c0_89 = arith.constant 0 : index
    %119 = vector.load %arg26[%c0_88, %c0_89] : memref<4x1xf32, #tpu.memory_space<vmem>>, vector<4x1xf32>
    %120 = vector.broadcast %119 : vector<4x1xf32> to vector<4x16xf32>
    %121 = arith.addf %118, %120 : vector<4x16xf32>
    %c0_90 = arith.constant 0 : index
    %c0_91 = arith.constant 0 : index
    %c0_92 = arith.constant 0 : index
    %122 = vector.load %arg27[%c0_90, %c0_91, %c0_92] : memref<1x4x16xf32, #tpu.memory_space<vmem>>, vector<1x4x16xf32>
    %123 = vector.shape_cast %122 : vector<1x4x16xf32> to vector<4x16xf32>
    %124 = vector.shape_cast %121 : vector<4x16xf32> to vector<1x4x16xf32>
    tpu.vector_store %arg27[%c0_90, %c0_91, %c0_92], %124 {strides = array<i32>} : memref<1x4x16xf32, #tpu.memory_space<vmem>>, vector<1x4x16xf32>,
    return
  }
  func.func @transform_0(%arg0: i32) -> (i32, i32, i32) {
    %c0_i32 = arith.constant 0 : i32
    %c0_i32_0 = arith.constant 0 : i32
    %c0_i32_1 = arith.constant 0 : i32
    return %arg0, %c0_i32, %c0_i32_0 : i32, i32, i32
  }
  func.func @transform_1(%arg0: i32) -> (i32, i32, i32) {
    %c0_i32 = arith.constant 0 : i32
    %c0_i32_0 = arith.constant 0 : i32
    %c0_i32_1 = arith.constant 0 : i32
    return %arg0, %c0_i32, %c0_i32_0 : i32, i32, i32
  }
  func.func @transform_2(%arg0: i32) -> (i32, i32) {
    %c0_i32 = arith.constant 0 : i32
    %c0_i32_0 = arith.constant 0 : i32
    %c0_i32_1 = arith.constant 0 : i32
    return %c0_i32, %c0_i32_0 : i32, i32
  }
  func.func @transform_3(%arg0: i32) -> (i32, i32) {
    %c0_i32 = arith.constant 0 : i32
    %c0_i32_0 = arith.constant 0 : i32
    %c0_i32_1 = arith.constant 0 : i32
    return %c0_i32, %c0_i32_0 : i32, i32
  }
  func.func @transform_4(%arg0: i32) -> (i32, i32) {
    %c0_i32 = arith.constant 0 : i32
    %c0_i32_0 = arith.constant 0 : i32
    %c0_i32_1 = arith.constant 0 : i32
    return %c0_i32, %c0_i32_0 : i32, i32
  }
  func.func @transform_5(%arg0: i32) -> (i32, i32) {
    %c0_i32 = arith.constant 0 : i32
    %c0_i32_0 = arith.constant 0 : i32
    %c0_i32_1 = arith.constant 0 : i32
    return %c0_i32, %c0_i32_0 : i32, i32
  }
  func.func @transform_6(%arg0: i32) -> (i32, i32) {
    %c0_i32 = arith.constant 0 : i32
    %c0_i32_0 = arith.constant 0 : i32
    %c0_i32_1 = arith.constant 0 : i32
    return %c0_i32, %c0_i32_0 : i32, i32
  }
  func.func @transform_7(%arg0: i32) -> (i32, i32) {
    %c0_i32 = arith.constant 0 : i32
    %c0_i32_0 = arith.constant 0 : i32
    %c0_i32_1 = arith.constant 0 : i32
    return %c0_i32, %c0_i32_0 : i32, i32
  }
  func.func @transform_8(%arg0: i32) -> (i32, i32) {
    %c0_i32 = arith.constant 0 : i32
    %c0_i32_0 = arith.constant 0 : i32
    %c0_i32_1 = arith.constant 0 : i32
    return %c0_i32, %c0_i32_0 : i32, i32
  }
  func.func @transform_9(%arg0: i32) -> (i32, i32) {
    %c0_i32 = arith.constant 0 : i32
    %c0_i32_0 = arith.constant 0 : i32
    %c0_i32_1 = arith.constant 0 : i32
    return %c0_i32, %c0_i32_0 : i32, i32
  }
  func.func @transform_10(%arg0: i32) -> (i32, i32) {
    %c0_i32 = arith.constant 0 : i32
    %c0_i32_0 = arith.constant 0 : i32
    %c0_i32_1 = arith.constant 0 : i32
    return %c0_i32, %c0_i32_0 : i32, i32
  }
  func.func @transform_11(%arg0: i32) -> (i32, i32) {
    %c0_i32 = arith.constant 0 : i32
    %c0_i32_0 = arith.constant 0 : i32
    %c0_i32_1 = arith.constant 0 : i32
    return %c0_i32, %c0_i32_0 : i32, i32
  }
  func.func @transform_12(%arg0: i32) -> (i32, i32) {
    %c0_i32 = arith.constant 0 : i32
    %c0_i32_0 = arith.constant 0 : i32
    %c0_i32_1 = arith.constant 0 : i32
    return %c0_i32, %c0_i32_0 : i32, i32
  }
  func.func @transform_13(%arg0: i32) -> (i32, i32) {
    %c0_i32 = arith.constant 0 : i32
    %c0_i32_0 = arith.constant 0 : i32
    %c0_i32_1 = arith.constant 0 : i32
    return %c0_i32, %c0_i32_0 : i32, i32
  }
  func.func @transform_14(%arg0: i32) -> (i32, i32) {
    %c0_i32 = arith.constant 0 : i32
    %c0_i32_0 = arith.constant 0 : i32
    %c0_i32_1 = arith.constant 0 : i32
    return %c0_i32, %c0_i32_0 : i32, i32
  }
  func.func @transform_15(%arg0: i32) -> (i32, i32) {
    %c0_i32 = arith.constant 0 : i32
    %c0_i32_0 = arith.constant 0 : i32
    %c0_i32_1 = arith.constant 0 : i32
    return %c0_i32, %c0_i32_0 : i32, i32
  }
  func.func @transform_16(%arg0: i32) -> (i32, i32) {
    %c0_i32 = arith.constant 0 : i32
    %c0_i32_0 = arith.constant 0 : i32
    %c0_i32_1 = arith.constant 0 : i32
    return %c0_i32, %c0_i32_0 : i32, i32
  }
  func.func @transform_17(%arg0: i32) -> (i32, i32) {
    %c0_i32 = arith.constant 0 : i32
    %c0_i32_0 = arith.constant 0 : i32
    %c0_i32_1 = arith.constant 0 : i32
    return %c0_i32, %c0_i32_0 : i32, i32
  }
  func.func @transform_18(%arg0: i32) -> (i32, i32) {
    %c0_i32 = arith.constant 0 : i32
    %c0_i32_0 = arith.constant 0 : i32
    %c0_i32_1 = arith.constant 0 : i32
    return %c0_i32, %c0_i32_0 : i32, i32
  }
  func.func @transform_19(%arg0: i32) -> (i32, i32) {
    %c0_i32 = arith.constant 0 : i32
    %c0_i32_0 = arith.constant 0 : i32
    %c0_i32_1 = arith.constant 0 : i32
    return %c0_i32, %c0_i32_0 : i32, i32
  }
  func.func @transform_20(%arg0: i32) -> (i32, i32, i32) {
    %c0_i32 = arith.constant 0 : i32
    %c0_i32_0 = arith.constant 0 : i32
    %c0_i32_1 = arith.constant 0 : i32
    %c0_i32_2 = arith.constant 0 : i32
    return %c0_i32, %c0_i32_0, %c0_i32_1 : i32, i32, i32
  }
  func.func @transform_21(%arg0: i32) -> (i32, i32) {
    %c0_i32 = arith.constant 0 : i32
    %c0_i32_0 = arith.constant 0 : i32
    %c0_i32_1 = arith.constant 0 : i32
    return %c0_i32, %c0_i32_0 : i32, i32
  }
  func.func @transform_22(%arg0: i32) -> (i32, i32) {
    %c0_i32 = arith.constant 0 : i32
    %c0_i32_0 = arith.constant 0 : i32
    %c0_i32_1 = arith.constant 0 : i32
    return %c0_i32, %c0_i32_0 : i32, i32
  }
  func.func @transform_23(%arg0: i32) -> (i32, i32, i32) {
    %c0_i32 = arith.constant 0 : i32
    %c0_i32_0 = arith.constant 0 : i32
    %c0_i32_1 = arith.constant 0 : i32
    %c0_i32_2 = arith.constant 0 : i32
    return %c0_i32, %c0_i32_0, %c0_i32_1 : i32, i32, i32
  }
  func.func @transform_24(%arg0: i32) -> (i32, i32) {
    %c0_i32 = arith.constant 0 : i32
    %c0_i32_0 = arith.constant 0 : i32
    %c0_i32_1 = arith.constant 0 : i32
    return %c0_i32, %c0_i32_0 : i32, i32
  }
  func.func @transform_25(%arg0: i32) -> (i32, i32) {
    %c0_i32 = arith.constant 0 : i32
    %c0_i32_0 = arith.constant 0 : i32
    %c0_i32_1 = arith.constant 0 : i32
    return %c0_i32, %c0_i32_0 : i32, i32
  }
  func.func @transform_26(%arg0: i32) -> (i32, i32, i32) {
    %c0_i32 = arith.constant 0 : i32
    %c0_i32_0 = arith.constant 0 : i32
    %c0_i32_1 = arith.constant 0 : i32
    return %arg0, %c0_i32, %c0_i32_0 : i32, i32, i32
  }
}

</mosaic_0001>

<bundles_post_ra>
// kernel: atten_diffusion_ae_forward.1
= control target key start
LH: loop header
LB: loop body
LE: loop exit
PB: predicated region body
PF: predicated region fallthrough
CT: control target
= control target key end

     0   :  { %s3432_s0 = inlined_call_operand.vmem [shape: f32[2,8,16], index: 0, kind: input, shape index: {}]   ;;  %s3433_s1 = inlined_call_operand.vmem [shape: f32[2,8,16], index: 1, kind: input, shape index: {}]   ;;  %s3434_s2 = inlined_call_operand.vmem [shape: f32[8,24], index: 2, kind: input, shape index: {}]   ;;  %s3435_s3 = inlined_call_operand.vmem [shape: f32[8,1], index: 3, kind: input, shape index: {}]   ;;  %s3436_s4 = inlined_call_operand.vmem [shape: f32[14,7], index: 4, kind: input, shape index: {}]   ;;  %s3437_s5 = inlined_call_operand.vmem [shape: f32[16,24], index: 5, kind: input, shape index: {}]   ;;  %s3438_s6 = inlined_call_operand.vmem [shape: f32[16,1], index: 6, kind: input, shape index: {}]   ;;  %s3439_s7 = inlined_call_operand.vmem [shape: f32[5,3], index: 7, kind: input, shape index: {}]   ;;  %s3440_s8 = inlined_call_operand.vmem [shape: f32[32,16], index: 8, kind: input, shape index: {}]   ;;  %s3441_s9 = inlined_call_operand.vmem [shape: f32[32,1], index: 9, kind: input, shape index: {}]   ;;  %s3442_s10 = inlined_call_operand.vmem [shape: f32[32,32], index: 10, kind: input, shape index: {}]   ;;  %s3443_s11 = inlined_call_operand.vmem [shape: f32[32,1], index: 11, kind: input, shape index: {}]   ;;  %s3444_s12 = inlined_call_operand.vmem [shape: f32[32,32], index: 12, kind: input, shape index: {}]   ;;  %s3445_s13 = inlined_call_operand.vmem [shape: f32[32,1], index: 13, kind: input, shape index: {}]   ;;  %s3446_s14 = inlined_call_operand.vmem [shape: f32[32,1], index: 14, kind: input, shape index: {}]   ;;  %s3447_s15 = inlined_call_operand.vmem [shape: f32[32,1], index: 15, kind: input, shape index: {}]   ;;  %s3448_s16 = inlined_call_operand.vmem [shape: f32[1,3], index: 16, kind: input, shape index: {}]   ;;  %s3449_s17 = inlined_call_operand.vmem [shape: f32[1,3], index: 17, kind: input, shape index: {}]   ;;  %s3450_s18 = inlined_call_operand.vmem [shape: f32[48,32], index: 18, kind: input, shape index: {}]   ;;  %s3451_s19 = inlined_call_operand.vmem [shape: f32[16,1], index: 19, kind: input, shape index: {}]   ;;  %s3452_s20 = inlined_call_operand.vmem [shape: f32[3,3,7], index: 20, kind: input, shape index: {}]   ;;  %s3453_s21 = inlined_call_operand.vmem [shape: f32[24,16], index: 21, kind: input, shape index: {}]   ;;  %s3454_s22 = inlined_call_operand.vmem [shape: f32[8,1], index: 22, kind: input, shape index: {}]   ;;  %s3455_s23 = inlined_call_operand.vmem [shape: f32[3,7,16], index: 23, kind: input, shape index: {}]   ;;  %s3456_s24 = inlined_call_operand.vmem [shape: f32[4,8], index: 24, kind: input, shape index: {}]   ;;  %s3457_s25 = inlined_call_operand.vmem [shape: f32[4,1], index: 25, kind: input, shape index: {}]   ;;  %s3458_s26 = inlined_call_operand.hbm [shape: f32[2,4,16], index: 26, kind: output, shape index: {}]  }
   0x1   :  { %3478 = sst [smem:[#allocation12_spill]] %s3432_s0 }
   0x2   :  { %3479 = sst [smem:[#allocation13_spill]] %s3433_s1 }
   0x3   :  { %3480 = sst [smem:[#allocation14_spill]] %s3434_s2 }
   0x4   :  { %3481 = sst [smem:[#allocation15_spill]] %s3435_s3 }
   0x5   :  { %3482 = sst [smem:[#allocation16_spill]] %s3436_s4 }
   0x6   :  { %3483 = sst [smem:[#allocation17_spill]] %s3437_s5 }
   0x7   :  { %3484 = sst [smem:[#allocation18_spill]] %s3438_s6 }
   0x8   :  { %3485 = sst [smem:[#allocation19_spill]] %s3439_s7 }
   0x9   :  { %3486 = sst [smem:[#allocation20_spill]] %s3440_s8 }
   0xa   :  { %3487 = sst [smem:[#allocation21_spill]] %s3441_s9 }
   0xb   :  { %3488 = sst [smem:[#allocation22_spill]] %s3442_s10 }
   0xc   :  { %3489 = sst [smem:[#allocation23_spill]] %s3456_s24 }
   0xd   :  { %3490 = sst [smem:[#allocation24_spill]] %s3458_s26 }
   0xe   :  { %31 = vsyncpa [#allocation3], 0 }
   0xf   :  { %33 = vsyncpa [#allocation3 + $0x1], 0  ;;  %s3063_s27 = smov 0   ;;  %s3065_s3 = smov 0  }
  0x10   :  { %s3067_s7 = smov 0   ;;  %s3069_s28 = smov 0  }
  0x11 LB: > { %3491 = sst [smem:[#allocation5_spill]] %s2906_s27  ;;  %s3084_s8 = sadd.s32 4294967295, %s2918_s28   ;;  %s2918_s28 = sphi %s3069_s28, %s3517_s28   ;;  %s2914_s7 = sphi %s3067_s7, %s3519_s7   ;;  %s2910_s3 = sphi %s3065_s3, %s3521_s3   ;;  %s2906_s27 = sphi %s3063_s27, %s3520_s27  }
  0x12   : > { %3492 = sst [smem:[#allocation6_spill]] %s2914_s7  ;;  %s2496_s4 = sadd.s32 4294967294, %s2918_s28  }
  0x13   : > { %3493 = sst [smem:[#allocation7_spill]] %s2918_s28  ;;  %s3088_s29 = sadd.s32 1, %s2918_s28  }
  0x14   : > { %3494 = sst [smem:[#allocation8_spill]] %s3088_s29  ;;  %s602_s0 = sadd.s32 1, %s2914_s7 }
  0x15   : > { %s599_s9 = ssub.s32 %s2918_s28, %s3088_s29  ;;  %p612_p0 = scmp.ne.s32.totalorder %s2914_s7, %s2910_s3 }
  0x16   : > { %p600_p1 = scmp.eq.s32.totalorder %s599_s9, 0  ;;  %p613_p2 = scmp.eq.s32.totalorder %s3084_s8, 1 }
  0x17   : > { %p618_p3 = scmp.ne.s32.totalorder %s2910_s3, %s2906_s27  ;;  %p619_p4 = scmp.eq.s32.totalorder %s2496_s4, 1 }
  0x18   : > { %s3099_s30 = scalar_select %p600_p1, %s2914_s7, %s602_s0  }
  0x19   : > { %p3101_p5 = por %p613_p2, %p612_p0  ;;  %p3105_p6 = por %p619_p4, %p618_p3 }
  0x1a   : > { %3495 = sst [smem:[#allocation9_spill]] %s3099_s30  ;;  %p2499_p7 = scmp.ge.s32.totalorder %s2918_s28, 1 }
  0x1b   : > { %s3496_s2 = scalar_select %p3101_p5, 1, 0 }
  0x1c   : > { %s3498_s5 = scalar_select %p3105_p6, 1, 0 }
  0x1d   : > { %3497 = sst [smem:[#allocation10_spill]] %s3496_s2  ;;  %p723_p8 = scmp.lt.s32.totalorder %s2918_s28, 3 }
  0x1e   : > { %3499 = sst [smem:[#allocation11_spill]] %s3498_s5 }
  0x1f   : > { %p724_p9 = pnand %p2499_p7, %p723_p8 }
  0x20   : > { %p796_p10 = scmp.lt.s32.totalorder (!%p724_p9), %s3084_s8, 1  ;;  %v2920_v0 = vmov (!%p724_p9), 0.0|0.0   ;;  %vm2921_vm0 = vmmov (!%p724_p9), 0   ;;  %v2922_v1 = vmov (!%p724_p9), 0.0   ;;  %s3500_s4 = sld [smem:[#allocation16_spill]] (!%p724_p9)  ;;  %vm901_vm1 = vcmask (!%p724_p9), 1045504  }
  0x21   : > { %727 = sbr.rel (%p724_p9) target bundleno = 3308 (0xcec), region = 124  ;;  %2760 = vmatprep.subr.bf16.mxu0 (!%p724_p9), %v2920_v0  ;;  %2763 = vmatprep.subr.bf16.mxu1 (!%p724_p9), %v2920_v0  ;;  %vm2923_vm2 = vmmov (!%p724_p9), 1   ;;  %s3501_s5 = sld [smem:[#allocation12_spill]] (!%p724_p9)  ;;  %vm815_vm4 = vcmask (!%p724_p9), 195584   ;;  %v2926_v13 = vmov (!%p724_p9), 0   ;;  %vm897_vm5 = vcmask (!%p724_p9), 113664  }
  0x22   : > { %2633 = vmatprep.mubr.msk.f32.mxu0 (!%p724_p9), %vm2921_vm0, %v2922_v1  ;;  %2640 = vmatprep.mubr.msk.f32.mxu1 (!%p724_p9), %vm2921_vm0, %v2922_v1  ;;  %vm2765_vm3 = vmpackc.low (!%p724_p9), %vm901_vm1, %vm2923_vm2  ;;  %s3502_s2 = sld [smem:[#allocation13_spill]] (!%p724_p9)  ;;  %s2924_s6 = smov (!%p724_p9), 127   ;;  %vm1086_vm6 = vcmask (!%p724_p9), 1044480   ;;  %vm1079_vm7 = vcmask (!%p724_p9), 39936   ;;  %vm1167_vm8 = vcmask (!%p724_p9), 23552   ;;  %vm1182_vm9 = vcmask (!%p724_p9), 130048  }
  0x23   : > { %s2925_s1 = smov (!%p724_p9), 126   ;;  %2852 = vset.pattern.permute.xlu1 (!%p724_p9), %v2926_v13  ;;  %2853 = vset.pattern.permute.xlu0 (!%p724_p9), %v2926_v13  ;;  %s3506_s9 = sld [smem:[#allocation18_spill]] (!%p724_p9)  ;;  %vm1288_vm10 = vcmask (!%p724_p9), 261120   ;;  %vm1495_vm11 = vcmask (!%p724_p9), 7168   ;;  %vm1725_vm12 = vcmask (!%p724_p9), 1042432   ;;  %vm2091_vm13 = vcmask (!%p724_p9), 1046528  }
  0x24   : > { %s3509_s26 = sld [smem:[#allocation22_spill]] (!%p724_p9)  ;;  %vm2087_vm14 = vcmask (!%p724_p9), 56320   ;;  %s3511_s0 = sld [smem:[#allocation23_spill]] (!%p724_p9)  ;;  %vm2335_vm15 = vcmask (!%p724_p9), 64512  }
  0x25   : > { %s793_s7 = sand.u32 (!%p724_p9), 1, %s2910_s3   ;;  %s2927_s28 = smov (!%p724_p9), [#allocation2]  }
  0x26   : > { %v889_v2 = vld [vmem:[%s3500_s4] sm:$0xff] (!%p724_p9)  ;;  %v890_v3 = vld [vmem:[%s3500_s4 + $0x8] sm:$0x3f] (!%p724_p9) }
  0x27   : > { %v2764_v4 = vpack.c.bf16 (!%p724_p9), %v890_v3, %v889_v2 }
  0x28   : > { %s797_s10 = scalar_select %p796_p10, %s3084_s8, 1 }
  0x29   : > { %2766 = vmatpush3.bf16.msk.msra.mxu1 %vm2765_vm3, %v2764_v4  ;;  %v1067_v22 = vld [vmem:[%s3506_s9] sm:$0xff]  ;;  %v1068_v28 = vld [vmem:[%s3506_s9 + $0x8] sm:$0xff]  ;;  %s3513_s9 = sld [smem:[#allocation24_spill]] }
  0x2a   : > { %s2501_s30 = sshll.u32 %s797_s10, 3  ;;  %v1280_v48 = vld [vmem:[%s3509_s26] sm:$0xff]  ;;  %s3510_s10 = sld [smem:[#allocation21_spill]]  ;;  %v1281_v63 = vld [vmem:[%s3509_s26 + $0x8] sm:$0xff]  ;;  %v1282_v2 = vld [vmem:[%s3509_s26 + $0x10] sm:$0xff] }
  0x2b   : > { %s799_s27 = scalar_lea.vmem %s3501_s5, %s2501_s30  ;;  %s803_s24 = scalar_lea.vmem %s3502_s2, %s2501_s30  ;;  %v1283_v3 = vld [vmem:[%s3509_s26 + $0x18] sm:$0xff]  ;;  %v1386_v4 = vld [vmem:[%s3444_s12] sm:$0xff] }
  0x2c   : > { %v804_v5 = vld [vmem:[%s799_s27] sm:$0xff]  ;;  %s3503_s5 = sld [smem:[#allocation14_spill]]  ;;  %s3504_s27 = sld [smem:[#allocation15_spill]] }
  0x2d   : > { %v805_v6 = vld [vmem:[%s803_s24] sm:$0xff]  ;;  %s3505_s2 = sld [smem:[#allocation17_spill]]  ;;  %s3508_s30 = sld [smem:[#allocation20_spill]] }
  0x2e   : > { %v806_v7 = vadd.f32 %v805_v6, %v804_v5  ;;  %v1285_v5 = vld [vmem:[%s3443_s11 + $0x8] sm:$0xff]  ;;  %v1284_v6 = vld [vmem:[%s3443_s11] sm:$0xff] }
  0x30   : > { %808 = vrot.lane.b32.xlu0 %v806_v7, %s2924_s6  ;;  %v1179_v49 = vld [vmem:[%s3510_s10 + $0x8] sm:$0xff]  ;;  %v1178_v50 = vld [vmem:[%s3510_s10] sm:$0xff]  ;;  %v1181_v55 = vld [vmem:[%s3510_s10 + $0x18] sm:$0xff] }
  0x31   : > { %v1180_v56 = vld [vmem:[%s3510_s10 + $0x10] sm:$0xff] }
  0x32   : > { %v814_v11 = vld [vmem:[%s3503_s5] sm:$0xff]  ;;  %s3507_s5 = sld [smem:[#allocation19_spill]] }
  0x33   : > { %v891_v12 = vld [vmem:[%s3504_s27] sm:$0xff]  ;;  %v984_v26 = vld [vmem:[%s3505_s2 + $0x8] sm:$0xff]  ;;  %v1176_v46 = vld [vmem:[%s3508_s30 + $0x10] sm:$0xff]  ;;  %s2412_s27 = scalar_lea.sflag [#allocation3], %s793_s7 }
  0x34   : > { %811 = vrot.lane.b32.xlu0 %v806_v7, %s2925_s1  ;;  %894 = vperm.xlu1 %2852, %v891_v12   ;;  %v983_v17 = vld [vmem:[%s3505_s2] sm:$0xff]  ;;  %v1175_v45 = vld [vmem:[%s3508_s30 + $0x8] sm:$0xff]  ;;  %v1177_v47 = vld [vmem:[%s3508_s30 + $0x18] sm:$0xff] }
  0x35   : > { %v1174_v41 = vld [vmem:[%s3508_s30] sm:$0xff]  ;;  %v1286_v12 = vld [vmem:[%s3443_s11 + $0x10] sm:$0xff] }
  0x38   : > { %v1066_v27 = vld [vmem:[%s3507_s5] sm:$0x1f] }
  0xa2   : > { %v809_v8 = vpop.permute.xlu0 %808 }
  0xa3   : > { %v2761_v9 = vpack.c.bf16 %v809_v8, %v806_v7 }
  0xa5   : > { %2762 = vmatpush3.bf16.msra.mxu0 %v2761_v9 }
  0xa6   : > { %2631 = vmatprep.subr.mxu0 %v2922_v1  ;;  %v812_v10 = vpop.permute.xlu0 %811 }
  0xa9   : > { %2632 = vmatpush3.msra.mxu0 %v812_v10 }
  0xaa   : > { %2634 = vmatmul.mubr.msk.f32.vlgmr.msra.gmra.mrb[0].mxu0 %vm815_vm4, %v814_v11  ;;  %2652 = vmatprep.subr.msk.mxu0 %vm1086_vm6, %v1066_v27  ;;  %v1287_v11 = vld [vmem:[%s3443_s11 + $0x18] sm:$0xff] }
  0xab   : > { %2653 = vmatpush3.msk.msra.mxu0 %vm1086_vm6, %v1066_v27 }
  0xb3   : > { %v895_v16 = vpop.permute.xlu1 %894 }
 0x17d   : > { %v885_v14 = vpop.f32.mrb[0].mxu0 }
 0x17e   : > { %v2635_v15 = vpop.f32.mrb[1].mxu0  ;;  %2641 = vmatmul.mubr.msk.f32.vlgmr.msra.gmra.mrb[0].mxu1 %vm897_vm5, %v885_v14 }
 0x17f   : > { %2649 = vmatprep.mubr.msk.f32.mxu1 %vm815_vm4, %v983_v17 }
 0x251   : > { %v971_v18 = vpop.f32.mrb[0].mxu1 }
 0x252   : > { %v972_v19 = vadd.f32 %v971_v18, %v895_v16  ;;  %v2642_v20 = vpop.f32.mrb[1].mxu1 }
 0x253   : > { %v1388_v20 = vld [vmem:[%s3444_s12 + $0x10] sm:$0xff] }
 0x254   : > { %v975_v21 = vmax.f32 %v972_v19, 0.0  ;;  %v1387_v19 = vld [vmem:[%s3444_s12 + $0x8] sm:$0xff] }
 0x256   : > { %980 = vrot.lane.b32.xlu0 %v975_v21, %s2925_s1  ;;  %977 = vrot.lane.b32.xlu1 %v975_v21, %s2924_s6  ;;  %s2500_s1 = sshll.u32 %s793_s7, 2  ;;  %s2555_s6 = sshll.u32 %s3084_s8, 6 }
 0x257   : > { %s795_s5 = scalar_lea.vmem [#allocation2], %s2500_s1  ;;  %s3390_s10 = scalar_lea.hbm %s3513_s9, %s2555_s6 }
 0x258   : > { %s2425_s2 = sshll.u32 %s795_s5, 4  ;;  %s3392_s2 = int_to_ptr.vmem [resolvable:$true] %s2425_s2 }
 0x259   : > { %s2856_s8 = scalar_lea.vmem %s3392_s2, 64 }
 0x25a   : > { %1071 = vperm.xlu1 %2852, %v1067_v22   ;;  %1076 = vperm.xlu0 %2853, %v1068_v28   ;;  %v1391_v22 = vld [vmem:[%s3445_s13 + $0x8] sm:$0xff]  ;;  %v1393_v28 = vld [vmem:[%s3445_s13 + $0x18] sm:$0xff]  ;;  %p2857_p11 = scmp.ne.s32.totalorder %s3392_s2, %s2856_s8 }
 0x25c   : > { %p2858_p12 = pnand %p2857_p11, %p3101_p5 }
 0x25e   : > { %p2859_p13 = pneg %p2858_p12 }
 0x2c8   : > { %v978_v23 = vpop.permute.xlu1 %977  ;;  %v981_v25 = vpop.permute.xlu0 %980 }
 0x2c9   : > { %v2767_v24 = vpack.c.bf16 %v978_v23, %v975_v21  ;;  %v1389_v21 = vld [vmem:[%s3444_s12 + $0x18] sm:$0xff]  ;;  %v1390_v23 = vld [vmem:[%s3445_s13] sm:$0xff] }
 0x2cb   : > { %2768 = vmatprep.subr.bf16.mxu1 %v2767_v24 }
 0x2cc   : > { %2770 = vmatpush3.bf16.msra.mxu1 %v2767_v24 }
 0x2cd   : > { %2647 = vmatprep.subr.mxu1 %v981_v25 }
 0x2d0   : > { %2648 = vmatpush3.msra.mxu1 %v981_v25 }
 0x2d1   : > { %2650 = vmatmul.mubr.msk.f32.vlgmr.msra.gmra.mrb[2].mxu1 %vm815_vm4, %v984_v26 }
 0x2d2   : > { %2675 = vmatprep.mubr.msk.f32.mxu1 %vm1288_vm10, %v1280_v48 }
 0x2d9   : > { %v1077_v31 = vpop.permute.xlu0 %1076  ;;  %v1072_v33 = vpop.permute.xlu1 %1071 }
 0x3a4   : > { %v2651_v29 = vpop.f32.mrb[2].mxu1 }
 0x3a5   : > { %v1057_v30 = vpop.f32.mrb[3].mxu1 }
 0x3a6   : > { %2654 = vmatprep.mubr.msk.f32.mxu0 %vm1079_vm7, %v1057_v30  ;;  %v1392_v30 = vld [vmem:[%s3445_s13 + $0x10] sm:$0xff] }
 0x3a7   : > { %2655 = vmatmul.mubr.msk.f32.vlgmr.msra.gmra.mrb[2].mxu0 %vm1079_vm7, %v2651_v29 }
 0x3a8   : > { %2661 = vmatprep.mubr.msk.f32.mxu0 %vm1182_vm9, %v1174_v41 }
 0x47a   : > { %v2656_v32 = vpop.f32.mrb[2].mxu0 }
 0x47b   : > { %v1162_v34 = vadd.f32 %v2656_v32, %v1077_v31  ;;  %v1156_v35 = vpop.f32.mrb[3].mxu0 }
 0x47c   : > { %v1157_v36 = vadd.f32 %v1156_v35, %v1072_v33 }
 0x47d   : > { %v1166_v37 = vmax.f32 %v1162_v34, 0.0 }
 0x47e   : > { %v1165_v38 = vmax.f32 %v1157_v36, 0.0 }
 0x47f   : > { %v1171_v39 = vsel %vm1167_vm8, %v1166_v37, -inf }
 0x480   : > { %1172 = vmax.xlane.f32.xlu0 %v1171_v39  ;;  %v1168_v40 = vsel %vm1167_vm8, %v1165_v38, -inf }
 0x481   : > { %1169 = vmax.xlane.f32.xlu1 %v1168_v40 }
 0x50d   : > { %v1173_v42 = vpop.xlane.xlu0 %1172 }
 0x50e   : > { %v1170_v43 = vpop.xlane.xlu1 %1169 }
 0x50f   : > { %v2771_v44 = vpack.c.bf16 %v1173_v42, %v1170_v43 }
 0x511   : > { %2772 = vmatprep.subr.bf16.mxu0 %v2771_v44 }
 0x512   : > { %2774 = vmatpush3.bf16.msra.mxu0 %v2771_v44 }
 0x515   : > { %2662 = vmatmul.mubr.msk.f32.vlgmr.msra.gmra.mrb[4].mxu0 %vm1182_vm9, %v1175_v45 }
 0x516   : > { %2664 = vmatprep.mubr.msk.f32.mxu0 %vm1182_vm9, %v1176_v46 }
 0x519   : > { %2665 = vmatmul.mubr.msk.f32.gmra.mrb[6].mxu0 %vm1182_vm9, %v1177_v47 }
 0x51a   : > { %2689 = vmatprep.mubr.msk.f32.mxu0 %vm1288_vm10, %v1386_v4 }
 0x5e8   : > { %v2663_v51 = vpop.f32.mrb[4].mxu0 }
 0x5e9   : > { %v1267_v52 = vadd.f32 %v2663_v51, %v1179_v49  ;;  %v1261_v53 = vpop.f32.mrb[5].mxu0 }
 0x5ea   : > { %v1262_v54 = vadd.f32 %v1261_v53, %v1178_v50 }
 0x5ec   : > { %v2775_v57 = vpack.c.bf16 %v1267_v52, %v1262_v54  ;;  %v2666_v58 = vpop.f32.mrb[6].mxu0 }
 0x5ed   : > { %v1277_v59 = vadd.f32 %v2666_v58, %v1181_v55  ;;  %v1271_v60 = vpop.f32.mrb[7].mxu0 }
 0x5ee   : > { %v1272_v61 = vadd.f32 %v1271_v60, %v1180_v56  ;;  %2776 = vmatprep.subr.bf16.mxu1 %v2775_v57 }
 0x5ef   : > { %2778 = vmatpush3.bf16.msra.mxu1 %v2775_v57 }
 0x5f0   : > { %v2779_v62 = vpack.c.bf16 %v1277_v59, %v1272_v61 }
 0x5f2   : > { %2780 = vmatprep.subr.bf16.mxu1 %v2779_v62 }
 0x5f3   : > { %2782 = vmatpush3.bf16.msra.mxu1 %v2779_v62 }
 0x5f6   : > { %2676 = vmatmul.mubr.msk.f32.vlgmr.msra.gmra.mrb[4].mxu1 %vm1288_vm10, %v1281_v63 }
 0x5f7   : > { %2678 = vmatprep.mubr.msk.f32.mxu1 %vm1288_vm10, %v1282_v2 }
 0x5fa   : > { %2679 = vmatmul.mubr.msk.f32.gmra.mrb[6].mxu1 %vm1288_vm10, %v1283_v3 }
 0x6c9   : > { %v2677_v7 = vpop.f32.mrb[4].mxu1 }
 0x6ca   : > { %v1373_v8 = vadd.f32 %v2677_v7, %v1285_v5  ;;  %v1367_v9 = vpop.f32.mrb[5].mxu1 }
 0x6cb   : > { %v1368_v10 = vadd.f32 %v1367_v9, %v1284_v6 }
 0x6cd   : > { %v2783_v13 = vpack.c.bf16 %v1373_v8, %v1368_v10  ;;  %v2680_v14 = vpop.f32.mrb[6].mxu1 }
 0x6ce   : > { %v1383_v15 = vadd.f32 %v2680_v14, %v1287_v11  ;;  %v1377_v16 = vpop.f32.mrb[7].mxu1  ;;  %v1540_v14 = vld [vmem:[%s3446_s14 + $0x8] sm:$0xff] }
 0x6cf   : > { %v1378_v17 = vadd.f32 %v1377_v16, %v1286_v12  ;;  %2784 = vmatprep.subr.bf16.mxu0 %v2783_v13 }
 0x6d0   : > { %2786 = vmatpush3.bf16.msra.mxu0 %v2783_v13 }
 0x6d1   : > { %v2787_v18 = vpack.c.bf16 %v1383_v15, %v1378_v17  ;;  %v1539_v15 = vld [vmem:[%s3446_s14] sm:$0xff] }
 0x6d3   : > { %2788 = vmatprep.subr.bf16.mxu0 %v2787_v18 }
 0x6d4   : > { %2790 = vmatpush3.bf16.msra.mxu0 %v2787_v18 }
 0x6d7   : > { %2690 = vmatmul.mubr.msk.f32.vlgmr.msra.gmra.mrb[8].mxu0 %vm1288_vm10, %v1387_v19 }
 0x6d8   : > { %2692 = vmatprep.mubr.msk.f32.mxu0 %vm1288_vm10, %v1388_v20  ;;  %v1548_v20 = vld [vmem:[%s3447_s15 + $0x8] sm:$0xff] }
 0x6db   : > { %2693 = vmatmul.mubr.msk.f32.gmra.mrb[10].mxu0 %vm1288_vm10, %v1389_v21  ;;  %v1547_v21 = vld [vmem:[%s3447_s15] sm:$0xff] }
 0x7aa   : > { %v2691_v24 = vpop.f32.mrb[8].mxu0 }
 0x7ab   : > { %v1478_v25 = vadd.f32 %v2691_v24, %v1391_v22  ;;  %v1472_v26 = vpop.f32.mrb[9].mxu0  ;;  %v1541_v22 = vld [vmem:[%s3446_s14 + $0x10] sm:$0xff] }
 0x7ac   : > { %v1473_v27 = vadd.f32 %v1472_v26, %v1390_v23 }
 0x7ad   : > { %v1492_v29 = vadd.f32 %v1478_v25, %v1267_v52 }
 0x7ae   : > { %v1491_v31 = vadd.f32 %v1473_v27, %v1262_v54  ;;  %v2694_v32 = vpop.f32.mrb[10].mxu0 }
 0x7af   : > { %v1497_v33 = vsel %vm1495_vm11, %v1492_v29, 0.0  ;;  %v1488_v34 = vadd.f32 %v2694_v32, %v1393_v28  ;;  %v1482_v35 = vpop.f32.mrb[11].mxu0  ;;  %v1549_v28 = vld [vmem:[%s3447_s15 + $0x10] sm:$0xff] }
 0x7b0   : > { %v1496_v36 = vsel %vm1495_vm11, %v1491_v31, 0.0  ;;  %v1483_v37 = vadd.f32 %v1482_v35, %v1392_v30  ;;  %v1976_v30 = vld [vmem:[%s3451_s19] sm:$0xff] }
 0x7b1   : > { %v1498_v38 = vadd.f32 %v1497_v33, %v1496_v36  ;;  %v1494_v39 = vadd.f32 %v1488_v34, %v1277_v59  ;;  %v1550_v33 = vld [vmem:[%s3447_s15 + $0x18] sm:$0xff]  ;;  %v2320_v34 = vld [vmem:[%s3454_s22] sm:$0xff]  ;;  %v1977_v36 = vld [vmem:[%s3451_s19 + $0x8] sm:$0xff] }
 0x7b2   : > { %v1493_v40 = vadd.f32 %v1483_v37, %v1272_v61  ;;  %v2329_v37 = vld [vmem:[%s3457_s25] sm:$0xf] }
 0x7b3   : > { %v1501_v43 = vsel %vm1495_vm11, %v1494_v39, 0.0 }
 0x7b4   : > { %v1499_v41 = vsel %vm1495_vm11, %v1493_v40, 0.0 }
 0x7b5   : > { %v1500_v42 = vadd.f32 %v1499_v41, %v1498_v38  ;;  %v1597_v38 = vld [vmem:[%s3450_s18] sm:$0xff] }
 0x7b6   : > { %2703 = vmatprep.mubr.msk.f32.mxu1 %vm1288_vm10, %v1597_v38  ;;  %v2328_v38 = vld [vmem:[%s3511_s0] sm:$0xf]  ;;  %s2860_s0 = sshll.u32 %s2927_s28, 4  ;;  %s2861_s0 = int_to_ptr.vmem [resolvable:$false] %s2860_s0 }
 0x7b7   : > { %v1502_v44 = vadd.f32 %v1501_v43, %v1500_v42  ;;  %s2862_s1 = scalar_lea.vmem %s2861_s0, 128  ;;  %p2863_p0 = scmp.lt.s32.totalorder %s3392_s2, %s2861_s0 }
 0x7b8   : > { %p2864_p1 = scmp.lt.s32.totalorder %s2862_s1, %s2856_s8 }
 0x7b9   : > { %v1503_v45 = vrot.slane %v1502_v44, 4 }
 0x7ba   : > { %p2865_p2 = por %p2864_p1, %p2863_p0 }
 0x7bb   : > { %v1504_v46 = vadd.f32 %v1503_v45, %v1502_v44 }
 0x7bc   : > { %p2866_p3 = pnand %p2865_p2, %p2859_p13 }
 0x7bd   : > { %v1505_v47 = vrot.slane %v1504_v46, 2 }
 0x7bf   : > { %v1506_v48 = vadd.f32 %v1505_v47, %v1504_v46 }
 0x7c1   : > { %v1507_v49 = vrot.slane %v1506_v48, 1 }
 0x7c3   : > { %v1508_v50 = vadd.f32 %v1507_v49, %v1506_v48 }
 0x7c5   : > { %v1510_v51 = vmul.f32 0.03125, %v1508_v50 }
 0x7c7   : > { %v1511_v52 = vsub.f32 %v1491_v31, %v1510_v51  ;;  %v1512_v53 = vsub.f32 %v1492_v29, %v1510_v51  ;;  %v1513_v54 = vsub.f32 %v1493_v40, %v1510_v51  ;;  %v1514_v55 = vsub.f32 %v1494_v39, %v1510_v51  ;;  %v1542_v29 = vld [vmem:[%s3446_s14 + $0x18] sm:$0xff]  ;;  %v2523_v39 = vld [vmem:[%s3448_s16] ss:$0 sm:$0xff] }
 0x7c8   : > { %v2524_v40 = vld [vmem:[%s3449_s17] ss:$0 sm:$0xff] }
 0x7c9   : > { %v1515_v56 = vmul.f32 %v1511_v52, %v1511_v52  ;;  %v1516_v57 = vmul.f32 %v1512_v53, %v1512_v53  ;;  %v1517_v58 = vmul.f32 %v1513_v54, %v1513_v54  ;;  %v1518_v59 = vmul.f32 %v1514_v55, %v1514_v55 }
 0x7cb   : > { %v1519_v60 = vsel %vm1495_vm11, %v1515_v56, 0.0  ;;  %v1520_v61 = vsel %vm1495_vm11, %v1516_v57, 0.0  ;;  %v1522_v63 = vsel %vm1495_vm11, %v1517_v58, 0.0  ;;  %v1524_v3 = vsel %vm1495_vm11, %v1518_v59, 0.0  ;;  %v1599_v56 = vld [vmem:[%s3450_s18 + $0x10] sm:$0xff]  ;;  %v1600_v57 = vld [vmem:[%s3450_s18 + $0x18] sm:$0xff] }
 0x7cc   : > { %v1521_v62 = vadd.f32 %v1520_v61, %v1519_v60  ;;  %v1601_v58 = vld [vmem:[%s3450_s18 + $0x20] sm:$0xff] }
 0x7cd   : > { %v2531_v59 = vld [vmem:[%s3452_s20 + $0x4] sm:$0x7]  ;;  %v1716_v60 = vld [vmem:[%s3452_s20] sm:$0x7] }
 0x7ce   : > { %v1523_v2 = vadd.f32 %v1522_v63, %v1521_v62  ;;  %2712 = vmatprep.subr.msk.mxu0 %vm1725_vm12, %v2531_v59 }
 0x7cf   : > { %2713 = vmatpush3.msk.msra.mxu0 %vm1725_vm12, %v2531_v59 }
 0x7d0   : > { %v1525_v4 = vadd.f32 %v1524_v3, %v1523_v2  ;;  %2717 = vmatprep.subr.msk.mxu0 %vm1725_vm12, %v1716_v60  ;;  %v2538_v3 = vld [vmem:[%s3452_s20 + $0x8] sm:$0x7] }
 0x7d2   : > { %v1526_v5 = vrot.slane %v1525_v4, 4 }
 0x7d4   : > { %v1527_v6 = vadd.f32 %v1526_v5, %v1525_v4 }
 0x7d6   : > { %v1528_v7 = vrot.slane %v1527_v6, 2 }
 0x7d8   : > { %v1529_v8 = vadd.f32 %v1528_v7, %v1527_v6 }
 0x7da   : > { %v1530_v9 = vrot.slane %v1529_v8, 1 }
 0x7dc   : > { %v1531_v10 = vadd.f32 %v1530_v9, %v1529_v8 }
 0x7de   : > { %v1532_v11 = vmul.f32 0.03125, %v1531_v10 }
 0x7e0   : > { %v1533_v12 = vadd.f32 1e-05, %v1532_v11 }
 0x7e2   : > { %2854 = vrsqrt.f32 %v1533_v12 }
 0x7ec   : > { %v2855_v13 = vpop.eup %2854 }
 0x7ed   : > { %v1537_v16 = vmul.f32 %v2855_v13, %v1513_v54  ;;  %v1536_v17 = vmul.f32 %v2855_v13, %v1512_v53  ;;  %v1535_v18 = vmul.f32 %v2855_v13, %v1511_v52  ;;  %v1538_v19 = vmul.f32 %v2855_v13, %v1514_v55  ;;  %v1598_v55 = vld [vmem:[%s3450_s18 + $0x8] sm:$0xff] }
 0x7ef   : > { %v1544_v23 = vmul.f32 %v1540_v14, %v1536_v17  ;;  %v1543_v24 = vmul.f32 %v1539_v15, %v1535_v18  ;;  %v1545_v27 = vmul.f32 %v1541_v22, %v1537_v16  ;;  %v1546_v32 = vmul.f32 %v1542_v29, %v1538_v19  ;;  %v1992_v15 = vld [vmem:[%s3453_s21] sm:$0xff]  ;;  %v1993_v16 = vld [vmem:[%s3453_s21 + $0x8] sm:$0xff]  ;;  %v1994_v17 = vld [vmem:[%s3453_s21 + $0x10] sm:$0xff] }
 0x7f0   : > { %v2545_v18 = vld [vmem:[%s3455_s23 + $0x8] sm:$0x7f] }
 0x7f1   : > { %v1552_v25 = vadd.f32 %v1548_v20, %v1544_v23  ;;  %v1551_v26 = vadd.f32 %v1547_v21, %v1543_v24  ;;  %v1553_v31 = vadd.f32 %v1549_v28, %v1545_v27  ;;  %v1554_v35 = vadd.f32 %v1550_v33, %v1546_v32  ;;  %v2084_v21 = vld [vmem:[%s3455_s23] sm:$0x7f]  ;;  %v2550_v24 = vld [vmem:[%s3455_s23 + $0x10] sm:$0x7f] }
 0x7f3   : > { %1563 = vperm.xlu0 %2853, %v1552_v25   ;;  %1558 = vperm.xlu1 %2852, %v1551_v26  }
 0x7f7   : > { %1980 = vperm.xlu0 %2853, %v1976_v30   ;;  %1568 = vperm.xlu1 %2852, %v1553_v31  }
 0x7fb   : > { %2323 = vperm.xlu0 %2853, %v2320_v34   ;;  %1573 = vperm.xlu1 %2852, %v1554_v35  }
 0x7ff   : > { %1985 = vperm.xlu1 %2852, %v1977_v36  }
 0x803   : > { %2332 = vperm.xlu1 %2852, %v2329_v37  }
 0x872   : > { %v1564_v41 = vpop.permute.xlu0 %1563  ;;  %v1559_v42 = vpop.permute.xlu1 %1558 }
 0x873   : > { %v1583_v43 = vmul.f32 %v2523_v39, %v1564_v41  ;;  %v1582_v44 = vmul.f32 %v2523_v39, %v1559_v42 }
 0x875   : > { %v1594_v45 = vadd.f32 %v2524_v40, %v1583_v43  ;;  %v1593_v46 = vadd.f32 %v2524_v40, %v1582_v44 }
 0x876   : > { %v1569_v47 = vpop.permute.xlu1 %1568  ;;  %v1981_v8 = vpop.permute.xlu0 %1980 }
 0x877   : > { %v2791_v48 = vpack.c.bf16 %v1594_v45, %v1593_v46  ;;  %v1584_v49 = vmul.f32 %v2523_v39, %v1569_v47 }
 0x879   : > { %2792 = vmatprep.subr.bf16.mxu1 %v2791_v48  ;;  %v1595_v52 = vadd.f32 %v2524_v40, %v1584_v49 }
 0x87a   : > { %2794 = vmatpush3.bf16.msra.mxu1 %v2791_v48  ;;  %v1574_v50 = vpop.permute.xlu1 %1573  ;;  %v2324_v35 = vpop.permute.xlu0 %2323 }
 0x87b   : > { %v1585_v51 = vmul.f32 %v2523_v39, %v1574_v50 }
 0x87d   : > { %v1596_v53 = vadd.f32 %v2524_v40, %v1585_v51 }
 0x87e   : > { %v1986_v6 = vpop.permute.xlu1 %1985 }
 0x87f   : > { %v2795_v54 = vpack.c.bf16 %v1596_v53, %v1595_v52 }
 0x881   : > { %2796 = vmatprep.subr.bf16.mxu1 %v2795_v54 }
 0x882   : > { %2798 = vmatpush3.bf16.msra.mxu1 %v2795_v54 }
 0x883   : > { %2799 = vmatprep.subr.bf16.mxu1 %v2920_v0  ;;  %v1602_v0 = vld [vmem:[%s3450_s18 + $0x28] sm:$0xff] }
 0x885   : > { %2704 = vmatmul.mubr.msk.f32.vlgmr.msra.gmra.mrb[8].mxu1 %vm1288_vm10, %v1598_v55 }
 0x886   : > { %2706 = vmatprep.mubr.msk.f32.mxu1 %vm1288_vm10, %v1599_v56 }
 0x889   : > { %2707 = vmatmul.mubr.msk.f32.gmra.mrb[10].mxu1 %vm1288_vm10, %v1600_v57 }
 0x88a   : > { %2709 = vmatprep.mubr.msk.f32.mxu1 %vm1288_vm10, %v1601_v58 }
 0x88d   : > { %2710 = vmatmul.mubr.msk.f32.gmra.mrb[12].mxu1 %vm1288_vm10, %v1602_v0 }
 0x88e   : > { %2731 = vmatprep.mubr.msk.f32.mxu1 %vm2921_vm0, %v2922_v1 }
 0x958   : > { %v2705_v61 = vpop.f32.mrb[8].mxu1 }
 0x959   : > { %v1687_v62 = vpop.f32.mrb[9].mxu1 }
 0x95c   : > { %v2708_v63 = vpop.f32.mrb[10].mxu1 }
 0x95d   : > { %v1697_v2 = vpop.f32.mrb[11].mxu1 }
 0x95e   : > { %2714 = vmatprep.mubr.msk.f32.mxu0 %vm1167_vm8, %v1697_v2 }
 0x95f   : > { %2715 = vmatmul.mubr.msk.f32.vlgmr.msra.gmra.mrb[12].mxu0 %vm1167_vm8, %v2708_v63 }
 0x960   : > { %2719 = vmatprep.mubr.msk.f32.mxu0 %vm1167_vm8, %v1687_v62  ;;  %2718 = vmatpush3.msk.msra.mxu0 %vm1725_vm12, %v1716_v60  ;;  %v2711_v4 = vpop.f32.mrb[12].mxu1 }
 0x961   : > { %v1707_v5 = vpop.f32.mrb[13].mxu1  ;;  %2722 = vmatprep.subr.msk.mxu0 %vm1725_vm12, %v2538_v3 }
 0x967   : > { %2720 = vmatmul.mubr.msk.f32.vlgmr.msra.gmra.mrb[12].mxu0 %vm1167_vm8, %v2705_v61 }
 0x968   : > { %2724 = vmatprep.mubr.msk.f32.mxu0 %vm1167_vm8, %v1707_v5  ;;  %2723 = vmatpush3.msk.msra.mxu0 %vm1725_vm12, %v2538_v3 }
 0x969   : > { %2740 = vmatprep.subr.mxu0 %v2922_v1 }
 0x96f   : > { %2725 = vmatmul.mubr.msk.f32.vlgmr.msra.gmra.mrb[12].mxu0 %vm1167_vm8, %v2711_v4 }
 0x970   : > { %2742 = vmatprep.mubr.msk.f32.mxu0 %vm2921_vm0, %v2922_v1  ;;  %2741 = vmatpush3.msk.msra.mxu0 %vm2091_vm13, %v2545_v18 }
 0x971   : > { %2745 = vmatprep.subr.mxu0 %v2922_v1 }
 0xa42   : > { %v2726_v7 = vpop.f32.mrb[12].mxu0 }
 0xa43   : > { %v1989_v9 = vadd.f32 %v2726_v7, %v1986_v6  ;;  %v1965_v10 = vpop.f32.mrb[13].mxu0 }
 0xa44   : > { %v1988_v11 = vadd.f32 %v1981_v8, %v1965_v10 }
 0xa45   : > { %v1991_v12 = vmax.f32 %v1989_v9, 0.0 }
 0xa46   : > { %v1990_v13 = vmax.f32 %v1988_v11, 0.0 }
 0xa48   : > { %v2800_v14 = vpack.c.bf16 %v1991_v12, %v1990_v13 }
 0xa4a   : > { %2801 = vmatpush3.bf16.msra.mxu1 %v2800_v14 }
 0xa4b   : > { %2755 = vmatprep.subr.mxu1 %v2922_v1 }
 0xa4d   : > { %2732 = vmatmul.mubr.msk.f32.vlgmr.msra.gmra.mrb[14].mxu1 %vm1182_vm9, %v1992_v15 }
 0xa4e   : > { %2734 = vmatprep.mubr.msk.f32.mxu1 %vm2921_vm0, %v2922_v1 }
 0xa51   : > { %2735 = vmatmul.mubr.msk.f32.gmra.mrb[16].mxu1 %vm1182_vm9, %v1993_v16 }
 0xa52   : > { %2737 = vmatprep.mubr.msk.f32.mxu1 %vm2921_vm0, %v2922_v1 }
 0xa55   : > { %2738 = vmatmul.mubr.msk.f32.gmra.mrb[18].mxu1 %vm1182_vm9, %v1994_v17 }
 0xa56   : > { %2757 = vmatprep.mubr.msk.f32.mxu1 %vm2921_vm0, %v2922_v1 }
 0xb20   : > { %v2070_v19 = vpop.f32.mrb[14].mxu1 }
 0xb21   : > { %v2733_v20 = vpop.f32.mrb[15].mxu1 }
 0xb24   : > { %v2075_v22 = vpop.f32.mrb[16].mxu1 }
 0xb25   : > { %v2736_v23 = vpop.f32.mrb[17].mxu1  ;;  %2743 = vmatmul.mubr.msk.f32.vlgmr.msra.gmra.mrb[14].mxu0 %vm2087_vm14, %v2075_v22 }
 0xb26   : > { %2746 = vmatpush3.msk.msra.mxu0 %vm2091_vm13, %v2084_v21  ;;  %2747 = vmatprep.mubr.msk.f32.mxu0 %vm2921_vm0, %v2922_v1 }
 0xb27   : > { %2750 = vmatprep.subr.mxu0 %v2922_v1 }
 0xb28   : > { %v2080_v25 = vpop.f32.mrb[18].mxu1 }
 0xb29   : > { %2748 = vmatmul.mubr.msk.f32.vlgmr.msra.gmra.mrb[16].mxu0 %vm2087_vm14, %v2070_v19  ;;  %v2739_v26 = vpop.f32.mrb[19].mxu1 }
 0xb2a   : > { %2751 = vmatpush3.msk.msra.mxu0 %vm2091_vm13, %v2550_v24  ;;  %2752 = vmatprep.mubr.msk.f32.mxu0 %vm2921_vm0, %v2922_v1  ;;  %v2333_v1 = vpop.permute.xlu1 %2332  ;;  %vm2409_vm0 = vcmask 125952  }
 0xb2d   : > { %2753 = vmatmul.mubr.msk.f32.vlgmr.msra.gmra.mrb[18].mxu0 %vm2087_vm14, %v2080_v25 }
 0xbf8   : > { %v2161_v27 = vpop.f32.mrb[14].mxu0 }
 0xbf9   : > { %v2744_v28 = vpop.f32.mrb[15].mxu0 }
 0xbfc   : > { %v2237_v29 = vpop.f32.mrb[16].mxu0 }
 0xbfd   : > { %v2238_v30 = vadd.f32 %v2237_v29, %v2161_v27  ;;  %v2749_v31 = vpop.f32.mrb[17].mxu0 }
 0xc00   : > { %v2315_v32 = vpop.f32.mrb[18].mxu0 }
 0xc01   : > { %v2319_v33 = vadd.f32 %v2315_v32, %v2238_v30  ;;  %v2754_v34 = vpop.f32.mrb[19].mxu0 }
 0xc03   : > { %v2326_v36 = vadd.f32 %v2324_v35, %v2319_v33 }
 0xc05   : > { %v2327_v37 = vmax.f32 %v2326_v36, 0.0 }
 0xc07   : > { %2756 = vmatpush3.msra.mxu1 %v2327_v37 }
 0xc08   : > { %2758 = vmatmul.mubr.msk.f32.vlgmr.msra.gmra.mrb[20].mxu1 %vm2335_vm15, %v2328_v38 }
 0xcdb   : > { %v2405_v39 = vpop.f32.mrb[20].mxu1 }
 0xcdc   : > { %v2406_v40 = vadd.f32 %v2405_v39, %v2333_v1  ;;  %v2759_v41 = vpop.f32.mrb[21].mxu1 }
 0xcde   : > { %2410 = vst.msk [vmem:[%s795_s5] sm:$0xf] %vm2409_vm0, %v2406_v40 }
 0xcdf   : > { %2869 = shalt.err (!%p2866_p3)
}
 0xce0   : > { %s2870_s4 = scalar_lea.hbm %s3390_s10, 64  ;;  %s2874_s5 = scalar_lea.hbm %s3513_s9, 128 }
 0xce1   : > { %p2871_p4 = scmp.ne.s32.totalorder %s3390_s10, %s2870_s4  ;;  %p2875_p9 = scmp.lt.u32.totalorder %s3390_s10, %s3513_s9 }
 0xce2   : > { %p2876_p10 = scmp.lt.u32.totalorder %s2874_s5, %s2870_s4  ;;  %p2878_p12 = scmp.lt.u32.totalorder %s2870_s4, %s3390_s10 }
 0xce3   : > { %p2872_p7 = pnand %p2871_p4, %p3101_p5 }
 0xce4   : > { %p2877_p11 = por %p2876_p10, %p2875_p9 }
 0xce5   : > { %p2873_p8 = pneg %p2872_p7 }
 0xce6   : > { %p2879_p13 = por %p2878_p12, %p2877_p11 }
 0xce8   : > { %p2880_p0 = pnand %p2879_p13, %p2873_p8 }
 0xcea   : > { %2883 = shalt.err (!%p2880_p0)
}
 0xceb   : > { %2806 = dma.vmem_to_hbm [thread:$0]  (%p3101_p5), %s3392_s2, 64, %s3390_s10, %s2412_s27  }
 0xcec PF: > { %s3514_s8 = sld [smem:[#allocation7_spill]]  ;;  %s3515_s0 = sld [smem:[#allocation5_spill]] }
 0xcf2   : > { %p2812_p1 = scmp.ge.s32.totalorder %s3514_s8, 2  ;;  %s2437_s7 = sand.u32 1, %s3515_s0  }
 0xcf3   : > { %s2438_s6 = scalar_lea.sflag [#allocation3], %s2437_s7 }
 0xcf4   : > { %p2809_p2 = pnand %p2812_p1, %p3105_p6 }
 0xcf6   : > { %2901 = dma.done.wait (!%p2809_p2), %s2438_s6, 64  }
 0xcf7   : > { %2903 = vsyncadd (!%p2809_p2), %s2438_s6, 4294967232  ;;  %s3517_s28 = sld [smem:[#allocation8_spill]]  ;;  %s3518_s4 = sld [smem:[#allocation6_spill]] }
 0xcf8   : > { %s3519_s7 = sld [smem:[#allocation9_spill]]  ;;  %s3520_s27 = smov %s2910_s3 }
 0xcfd   : > { %p36_p3 = scmp.ge.s32.totalorder %s3517_s28, 4   ;;  %s3521_s3 = smov %s3518_s4 }
 0xcff   :  { %38 = sbr.rel (!%p36_p3) target bundleno = 17 (0x11), region = 166 }
 0xd06   :  { %2443 = vsyncpa [#allocation3], 1 }
 0xd07   :  { %2445 = vsyncpa [#allocation3 + $0x1], 1 }

</bundles_post_ra>
